<compile_context>
chip_gen: v5e
topology: v5e:2x2
jax: 0.10.0
libtpu: 0.0.40
codegen_flags: <defaults>
</compile_context>

<pallas_src>
import jax
import jax.numpy as jnp
from jax.experimental import pallas as pl
from jax.experimental.pallas import tpu as pltpu

HP = jax.lax.Precision.HIGHEST


def _simple_model_loss(dense_x, ls_i, target, emb_tables, params, tb=None):
    """Fused DLRM forward + BCE loss (one Pallas kernel, no DMA gather)."""
    (wb1, bb1, wb2, bb2, wt1, bt1, wt2, bt2) = params
    B, n_dense = dense_x.shape
    n_emb, num_rows, emb_dim = emb_tables.shape

    # ---- algebraic fusion of the back-to-back linears (no nonlinearity between them) ----
    wb = jnp.dot(wb1, wb2, precision=HP)                     # (13, 48)
    bb = jnp.dot(bb1, wb2, precision=HP) + bb2               # (1, 48)
    wt = jnp.dot(wt1, wt2, precision=HP)                     # ((n_emb+1)*48, 1)
    bt = jnp.dot(bt1, wt2, precision=HP) + bt2               # (1, 1)

    # x-slice of the fused top weight as a lane vector (for a VPU mul + lane reduce).
    wt_x = wt[:emb_dim, 0].reshape(1, emb_dim)               # (1, 48)
    # Fold every embedding table through its slice of the fused top weight:
    #   u[t, r] = emb_tables[t, r, :] . wt[(t+1)*48:(t+2)*48, 0]
    # (n_emb, num_rows) ~ 1 KiB here; stays resident in VMEM.
    # TODO(synk): for genuinely HBM-sized tables this fold would be computed tile-wise /
    # gathered with coalesced DMAs instead of kept fully resident.
    wt_emb = wt[emb_dim:, 0].reshape(n_emb, emb_dim)         # (n_emb, 48)
    u = jnp.einsum("trd,td->tr", emb_tables, wt_emb, precision=HP)   # (n_emb, num_rows)

    ids = ls_i.T.astype(jnp.int32)                           # (B, n_emb): batch on sublanes

    # Batch tile: whole batch if small, else 512-row tiles (per-row DMAs are gone, so no
    # reason for the old 128 cap; footprint is tiny vs VMEM on v5e/v6e/v7x).
    TB = tb if tb is not None else (B if B <= 512 else 512)
    assert B % TB == 0, "batch must be a multiple of the batch tile"
    num_tiles = B // TB

    def kernel(dense_ref, ids_ref, tgt_ref,                  # per-tile activations
               wb_ref, bb_ref, wtx_ref, u_ref, bt_ref,       # resident fused weights
               out_ref):                                     # (8,128) per-tile partial-sum block
        # 1) Bottom MLP (two linears fused) + ReLU:  x = relu(dense @ Wb + bb)
        x = jnp.maximum(
            jnp.dot(dense_ref[...], wb_ref[...],
                    preferred_element_type=jnp.float32) + bb_ref[...],
            0.0)                                             # (TB, 48)

        # 2) x-part of the fused top linear: VPU broadcast-mul + lane reduce (no N=1 MXU matmul).
        logits = jnp.sum(x * wtx_ref[...], axis=-1, keepdims=True) + bt_ref[...]   # (TB, 1)

        # 3) Embedding contribution: logits[b] += sum_t u[t, ids[b, t]]
        #    one-hot compare against the resident (n_emb, num_rows) folded table.
        ids_all = ids_ref[...]                               # (TB, n_emb) int32
        r_iota = jax.lax.broadcasted_iota(jnp.int32, (TB, num_rows), 1)
        for t in range(n_emb):                               # n_emb is tiny; unrolled
            onehot = (r_iota == ids_all[:, t:t + 1]).astype(jnp.float32)   # (TB, num_rows)
            logits = logits + jnp.sum(onehot * u_ref[t:t + 1, :],
                                      axis=-1, keepdims=True)

        # 4) Sigmoid + BCE (PyTorch BCELoss clamps log at -100); tile-local partial sum.
        #    (Batch stays on sublanes for this width-1 tail; negligible at these tile sizes.)
        p = jax.nn.sigmoid(logits)                           # (TB, 1)
        tgt = tgt_ref[...]
        log_p = jnp.maximum(jnp.log(p), -100.0)
        log_1mp = jnp.maximum(jnp.log(1.0 - p), -100.0)
        bce_sum = jnp.sum(-(tgt * log_p + (1.0 - tgt) * log_1mp))

        # 5) Write the partial sum into element (0,0) of this tile's (8,128) output block.
        row = jax.lax.broadcasted_iota(jnp.int32, (8, 128), 0)
        col = jax.lax.broadcasted_iota(jnp.int32, (8, 128), 1)
        out_ref[...] = jnp.where((row == 0) & (col == 0), bce_sum, 0.0)

    partials = pl.pallas_call(
        kernel,
        out_shape=jax.ShapeDtypeStruct((num_tiles * 8, 128), jnp.float32),
        grid=(num_tiles,),
        in_specs=[
            pl.BlockSpec((TB, n_dense), lambda i: (i, 0)),       # dense_x tile
            pl.BlockSpec((TB, n_emb), lambda i: (i, 0)),         # row ids tile
            pl.BlockSpec((TB, 1), lambda i: (i, 0)),             # target tile
            pl.BlockSpec((n_dense, emb_dim), lambda i: (0, 0)),  # Wb  (resident)
            pl.BlockSpec((1, emb_dim), lambda i: (0, 0)),        # bb
            pl.BlockSpec((1, emb_dim), lambda i: (0, 0)),        # Wt_x
            pl.BlockSpec((n_emb, num_rows), lambda i: (0, 0)),   # folded emb table u
            pl.BlockSpec((1, 1), lambda i: (0, 0)),              # bt
        ],
        out_specs=pl.BlockSpec((8, 128), lambda i: (i, 0)),      # per-tile partial-sum block
        compiler_params=pltpu.CompilerParams(
            dimension_semantics=("parallel",)),                  # no carried accumulator
    )(dense_x, ids, target, wb, bb, wt_x, u, bt)

    # Tiny cross-tile reduction + mean done outside the kernel (keeps the grid fully parallel).
    return jnp.sum(partials) / B


simple_model_loss = jax.jit(_simple_model_loss, static_argnames=("tb",))


def init_linear(key, fan_in, fan_out):
    # PyTorch nn.Linear default init: U(-1/sqrt(fan_in), 1/sqrt(fan_in)) for weight and bias.
    kw, kb = jax.random.split(key)
    bound = 1.0 / jnp.sqrt(fan_in)
    w = jax.random.uniform(kw, (fan_in, fan_out), jnp.float32, -bound, bound)
    b = jax.random.uniform(kb, (1, fan_out), jnp.float32, -bound, bound)
    return w, b


def reference_loss(dense_x, ls_i, target, emb_tables, params):
    # Unfused reference matching the original PyTorch module, at full fp32 precision.
    (wb1, bb1, wb2, bb2, wt1, bt1, wt2, bt2) = params
    h1 = jnp.dot(dense_x, wb1, precision=HP) + bb1
    x = jnp.maximum(jnp.dot(h1, wb2, precision=HP) + bb2, 0.0)
    ly = [emb_tables[t][ls_i[t]] for t in range(emb_tables.shape[0])]
    z = jnp.concatenate([x] + ly, axis=1)
    h2 = jnp.dot(z, wt1, precision=HP) + bt1
    p = jax.nn.sigmoid(jnp.dot(h2, wt2, precision=HP) + bt2)
    bce = -(target * jnp.maximum(jnp.log(p), -100.0)
            + (1.0 - target) * jnp.maximum(jnp.log(1.0 - p), -100.0))
    return jnp.mean(bce)


if __name__ == "__main__":
    key = jax.random.PRNGKey(0)
    B = 256               # batch (small; with tb=128 it exercises a 2-tile parallel grid)
    ln_emb_len = 3        # number of embedding tables
    num_rows = 100        # rows per embedding table
    emb_dim = 48

    ks = jax.random.split(key, 10)

    # Parameters (deterministic init).
    wb1, bb1 = init_linear(ks[0], 13, 64)
    wb2, bb2 = init_linear(ks[1], 64, 48)
    wt1, bt1 = init_linear(ks[2], (ln_emb_len + 1) * emb_dim, 256)
    wt2, bt2 = init_linear(ks[3], 256, 1)
    params = (wb1, bb1, wb2, bb2, wt1, bt1, wt2, bt2)

    # Inputs.
    dense_x = jax.random.normal(ks[4], (B, 13), jnp.float32)
    ls_i = jax.random.randint(ks[5], (ln_emb_len, B), 0, num_rows, dtype=jnp.int32)
    target = jax.random.bernoulli(ks[6], 0.5, (B, 1)).astype(jnp.float32)
    emb_tables = jax.random.normal(ks[7], (ln_emb_len, num_rows, emb_dim),
                                   jnp.float32) * 0.1

    loss = simple_model_loss(dense_x, ls_i, target, emb_tables, params, tb=128)
    jax.block_until_ready(loss)

    ref = reference_loss(dense_x, ls_i, target, emb_tables, params)
    assert jnp.allclose(loss, ref, atol=1e-4, rtol=1e-4), (loss, ref)

    print("KERNEL_OK")
</pallas_src>

<mosaic_0001>
module attributes {stable_mosaic.version = 11 : i64} {
  func.func @kernel(%arg0: i32, %arg1: memref<128x13xf32, #tpu.memory_space<vmem>>, %arg2: memref<128x3xi32, #tpu.memory_space<vmem>>, %arg3: memref<128x1xf32, #tpu.memory_space<vmem>>, %arg4: memref<13x48xf32, #tpu.memory_space<vmem>>, %arg5: memref<1x48xf32, #tpu.memory_space<vmem>>, %arg6: memref<1x48xf32, #tpu.memory_space<vmem>>, %arg7: memref<3x100xf32, #tpu.memory_space<vmem>>, %arg8: memref<1x1xf32, #tpu.memory_space<vmem>>, %arg9: memref<8x128xf32, #tpu.memory_space<vmem>>) attributes {dimension_semantics = [#tpu.dimension_semantics<parallel>], iteration_bounds = array<i64: 2>, scalar_prefetch = 0 : i64, scratch_operands = 0 : i64, tpu.core_type = #tpu.core_type<tc>, window_params = [{transform_indices = @transform_0, window_bounds = array<i64: 128, 13>}, {transform_indices = @transform_1, window_bounds = array<i64: 128, 3>}, {transform_indices = @transform_2, window_bounds = array<i64: 128, 1>}, {pipeline_mode = #tpu.pipeline_mode<synchronous>, transform_indices = @transform_3, window_bounds = array<i64: 13, 48>}, {pipeline_mode = #tpu.pipeline_mode<synchronous>, transform_indices = @transform_4, window_bounds = array<i64: 1, 48>}, {pipeline_mode = #tpu.pipeline_mode<synchronous>, transform_indices = @transform_5, window_bounds = array<i64: 1, 48>}, {pipeline_mode = #tpu.pipeline_mode<synchronous>, transform_indices = @transform_6, window_bounds = array<i64: 3, 100>}, {pipeline_mode = #tpu.pipeline_mode<synchronous>, transform_indices = @transform_7, window_bounds = array<i64: 1, 1>}, {transform_indices = @transform_8, window_bounds = array<i64: 8, 128>}]} {
    %c0 = arith.constant 0 : index
    %c0_0 = arith.constant 0 : index
    %0 = vector.load %arg1[%c0, %c0_0] : memref<128x13xf32, #tpu.memory_space<vmem>>, vector<128x13xf32>
    %c0_1 = arith.constant 0 : index
    %c0_2 = arith.constant 0 : index
    %1 = vector.load %arg4[%c0_1, %c0_2] : memref<13x48xf32, #tpu.memory_space<vmem>>, vector<13x48xf32>
    %cst = arith.constant dense<0.000000e+00> : vector<128x48xf32>
    %2 = tpu.matmul %0, %1, %cst {dimension_numbers = #tpu.dot_dimension_numbers<[1], [0], [0], [1], [0, 0, 1, 1], [], []>} : vector<128x13xf32>, vector<13x48xf32>, vector<128x48xf32> -> vector<128x48xf32>
    %c0_3 = arith.constant 0 : index
    %c0_4 = arith.constant 0 : index
    %3 = vector.load %arg5[%c0_3, %c0_4] : memref<1x48xf32, #tpu.memory_space<vmem>>, vector<1x48xf32>
    %4 = vector.broadcast %3 : vector<1x48xf32> to vector<128x48xf32>
    %5 = arith.addf %2, %4 : vector<128x48xf32>
    %cst_5 = arith.constant 0.000000e+00 : f32
    %6 = vector.broadcast %cst_5 : f32 to vector<128x48xf32>
    %7 = arith.maximumf %5, %6 : vector<128x48xf32>
    %c0_6 = arith.constant 0 : index
    %c0_7 = arith.constant 0 : index
    %8 = vector.load %arg6[%c0_6, %c0_7] : memref<1x48xf32, #tpu.memory_space<vmem>>, vector<1x48xf32>
    %9 = vector.broadcast %8 : vector<1x48xf32> to vector<128x48xf32>
    %10 = arith.mulf %7, %9 : vector<128x48xf32>
    %cst_8 = arith.constant dense<0.000000e+00> : vector<128xf32>
    %11 = vector.multi_reduction <add>, %10, %cst_8 [1] : vector<128x48xf32> to vector<128xf32>
    %12 = vector.shape_cast %11 : vector<128xf32> to vector<128x1xf32>
    %c0_9 = arith.constant 0 : index
    %c0_10 = arith.constant 0 : index
    %13 = vector.load %arg8[%c0_9, %c0_10] : memref<1x1xf32, #tpu.memory_space<vmem>>, vector<1x1xf32>
    %14 = vector.broadcast %13 : vector<1x1xf32> to vector<128x1xf32>
    %15 = arith.addf %12, %14 : vector<128x1xf32>
    %c0_11 = arith.constant 0 : index
    %c0_12 = arith.constant 0 : index
    %16 = vector.load %arg2[%c0_11, %c0_12] : memref<128x3xi32, #tpu.memory_space<vmem>>, vector<128x3xi32>
    %17 = tpu.iota {dimensions = array<i32: 1>} : vector<128x100xi32>
    %18 = vector.extract_strided_slice %16 {offsets = [0, 0], sizes = [128, 1], strides = [1, 1]} : vector<128x3xi32> to vector<128x1xi32>
    %19 = vector.broadcast %18 : vector<128x1xi32> to vector<128x100xi32>
    %20 = arith.cmpi eq, %17, %19 : vector<128x100xi32>
    %21 = arith.extui %20 : vector<128x100xi1> to vector<128x100xi32>
    %22 = arith.sitofp %21 : vector<128x100xi32> to vector<128x100xf32>
    %c0_13 = arith.constant 0 : index
    %c0_14 = arith.constant 0 : index
    %23 = vector.load %arg7[%c0_13, %c0_14] : memref<3x100xf32, #tpu.memory_space<vmem>>, vector<1x100xf32>
    %24 = vector.broadcast %23 : vector<1x100xf32> to vector<128x100xf32>
    %25 = arith.mulf %22, %24 : vector<128x100xf32>
    %cst_15 = arith.constant dense<0.000000e+00> : vector<128xf32>
    %26 = vector.multi_reduction <add>, %25, %cst_15 [1] : vector<128x100xf32> to vector<128xf32>
    %27 = vector.shape_cast %26 : vector<128xf32> to vector<128x1xf32>
    %28 = arith.addf %15, %27 : vector<128x1xf32>
    %29 = vector.extract_strided_slice %16 {offsets = [0, 1], sizes = [128, 1], strides = [1, 1]} : vector<128x3xi32> to vector<128x1xi32>
    %30 = vector.broadcast %29 : vector<128x1xi32> to vector<128x100xi32>
    %31 = arith.cmpi eq, %17, %30 : vector<128x100xi32>
    %32 = arith.extui %31 : vector<128x100xi1> to vector<128x100xi32>
    %33 = arith.sitofp %32 : vector<128x100xi32> to vector<128x100xf32>
    %c1 = arith.constant 1 : index
    %c0_16 = arith.constant 0 : index
    %34 = vector.load %arg7[%c1, %c0_16] : memref<3x100xf32, #tpu.memory_space<vmem>>, vector<1x100xf32>
    %35 = vector.broadcast %34 : vector<1x100xf32> to vector<128x100xf32>
    %36 = arith.mulf %33, %35 : vector<128x100xf32>
    %cst_17 = arith.constant dense<0.000000e+00> : vector<128xf32>
    %37 = vector.multi_reduction <add>, %36, %cst_17 [1] : vector<128x100xf32> to vector<128xf32>
    %38 = vector.shape_cast %37 : vector<128xf32> to vector<128x1xf32>
    %39 = arith.addf %28, %38 : vector<128x1xf32>
    %40 = vector.extract_strided_slice %16 {offsets = [0, 2], sizes = [128, 1], strides = [1, 1]} : vector<128x3xi32> to vector<128x1xi32>
    %41 = vector.broadcast %40 : vector<128x1xi32> to vector<128x100xi32>
    %42 = arith.cmpi eq, %17, %41 : vector<128x100xi32>
    %43 = arith.extui %42 : vector<128x100xi1> to vector<128x100xi32>
    %44 = arith.sitofp %43 : vector<128x100xi32> to vector<128x100xf32>
    %c2 = arith.constant 2 : index
    %c0_18 = arith.constant 0 : index
    %45 = vector.load %arg7[%c2, %c0_18] : memref<3x100xf32, #tpu.memory_space<vmem>>, vector<1x100xf32>
    %46 = vector.broadcast %45 : vector<1x100xf32> to vector<128x100xf32>
    %47 = arith.mulf %44, %46 : vector<128x100xf32>
    %cst_19 = arith.constant dense<0.000000e+00> : vector<128xf32>
    %48 = vector.multi_reduction <add>, %47, %cst_19 [1] : vector<128x100xf32> to vector<128xf32>
    %49 = vector.shape_cast %48 : vector<128xf32> to vector<128x1xf32>
    %50 = arith.addf %39, %49 : vector<128x1xf32>
    %51 = arith.negf %50 : vector<128x1xf32>
    %52 = math.exp %51 : vector<128x1xf32>
    %cst_20 = arith.constant 1.000000e+00 : f32
    %53 = vector.broadcast %cst_20 : f32 to vector<128x1xf32>
    %54 = arith.addf %53, %52 : vector<128x1xf32>
    %55 = arith.divf %53, %54 : vector<128x1xf32>
    %c0_21 = arith.constant 0 : index
    %c0_22 = arith.constant 0 : index
    %56 = vector.load %arg3[%c0_21, %c0_22] : memref<128x1xf32, #tpu.memory_space<vmem>>, vector<128x1xf32>
    %57 = math.log %55 : vector<128x1xf32>
    %cst_23 = arith.constant -1.000000e+02 : f32
    %58 = vector.broadcast %cst_23 : f32 to vector<128x1xf32>
    %59 = arith.maximumf %57, %58 : vector<128x1xf32>
    %cst_24 = arith.constant 1.000000e+00 : f32
    %60 = vector.broadcast %cst_24 : f32 to vector<128x1xf32>
    %61 = arith.subf %60, %55 : vector<128x1xf32>
    %62 = math.log %61 : vector<128x1xf32>
    %cst_25 = arith.constant -1.000000e+02 : f32
    %63 = vector.broadcast %cst_25 : f32 to vector<128x1xf32>
    %64 = arith.maximumf %62, %63 : vector<128x1xf32>
    %65 = arith.mulf %56, %59 : vector<128x1xf32>
    %cst_26 = arith.constant 1.000000e+00 : f32
    %66 = vector.broadcast %cst_26 : f32 to vector<128x1xf32>
    %67 = arith.subf %66, %56 : vector<128x1xf32>
    %68 = arith.mulf %67, %64 : vector<128x1xf32>
    %69 = arith.addf %65, %68 : vector<128x1xf32>
    %cst_27 = arith.constant 0.000000e+00 : f32
    %70 = vector.broadcast %cst_27 : f32 to vector<128x1xf32>
    %71 = arith.subf %70, %69 : vector<128x1xf32>
    %72 = vector.shape_cast %71 : vector<128x1xf32> to vector<1x128x1xf32>
    %cst_28 = arith.constant dense<0.000000e+00> : vector<1xf32>
    %73 = vector.multi_reduction <add>, %72, %cst_28 [1, 2] : vector<1x128x1xf32> to vector<1xf32>
    %74 = vector.shape_cast %73 : vector<1xf32> to vector<1x1x1xf32>
    %75 = vector.extract %74[0, 0, 0] : f32 from vector<1x1x1xf32>
    %76 = tpu.iota {dimensions = array<i32: 0>} : vector<8x128xi32>
    %77 = tpu.iota {dimensions = array<i32: 1>} : vector<8x128xi32>
    %c0_i32 = arith.constant 0 : i32
    %78 = vector.broadcast %c0_i32 : i32 to vector<8x128xi32>
    %79 = arith.cmpi eq, %76, %78 : vector<8x128xi32>
    %c0_i32_29 = arith.constant 0 : i32
    %80 = vector.broadcast %c0_i32_29 : i32 to vector<8x128xi32>
    %81 = arith.cmpi eq, %77, %80 : vector<8x128xi32>
    %82 = arith.andi %79, %81 : vector<8x128xi1>
    %cst_30 = arith.constant 0.000000e+00 : f32
    %83 = vector.broadcast %75 : f32 to vector<8x128xf32>
    %84 = vector.broadcast %cst_30 : f32 to vector<8x128xf32>
    %85 = arith.select %82, %83, %84 : vector<8x128xi1>, vector<8x128xf32>
    %c0_31 = arith.constant 0 : index
    %c0_32 = arith.constant 0 : index
    %86 = vector.load %arg9[%c0_31, %c0_32] : memref<8x128xf32, #tpu.memory_space<vmem>>, vector<8x128xf32>
    tpu.vector_store %arg9[%c0_31, %c0_32], %85 {strides = array<i32>} : memref<8x128xf32, #tpu.memory_space<vmem>>, vector<8x128xf32>,
    return
  }
  func.func @transform_0(%arg0: i32) -> (i32, i32) {
    %c0_i32 = arith.constant 0 : i32
    %c0_i32_0 = arith.constant 0 : i32
    return %arg0, %c0_i32 : i32, i32
  }
  func.func @transform_1(%arg0: i32) -> (i32, i32) {
    %c0_i32 = arith.constant 0 : i32
    %c0_i32_0 = arith.constant 0 : i32
    return %arg0, %c0_i32 : i32, i32
  }
  func.func @transform_2(%arg0: i32) -> (i32, i32) {
    %c0_i32 = arith.constant 0 : i32
    %c0_i32_0 = arith.constant 0 : i32
    return %arg0, %c0_i32 : i32, i32
  }
  func.func @transform_3(%arg0: i32) -> (i32, i32) {
    %c0_i32 = arith.constant 0 : i32
    %c0_i32_0 = arith.constant 0 : i32
    %c0_i32_1 = arith.constant 0 : i32
    return %c0_i32, %c0_i32_0 : i32, i32
  }
  func.func @transform_4(%arg0: i32) -> (i32, i32) {
    %c0_i32 = arith.constant 0 : i32
    %c0_i32_0 = arith.constant 0 : i32
    %c0_i32_1 = arith.constant 0 : i32
    return %c0_i32, %c0_i32_0 : i32, i32
  }
  func.func @transform_5(%arg0: i32) -> (i32, i32) {
    %c0_i32 = arith.constant 0 : i32
    %c0_i32_0 = arith.constant 0 : i32
    %c0_i32_1 = arith.constant 0 : i32
    return %c0_i32, %c0_i32_0 : i32, i32
  }
  func.func @transform_6(%arg0: i32) -> (i32, i32) {
    %c0_i32 = arith.constant 0 : i32
    %c0_i32_0 = arith.constant 0 : i32
    %c0_i32_1 = arith.constant 0 : i32
    return %c0_i32, %c0_i32_0 : i32, i32
  }
  func.func @transform_7(%arg0: i32) -> (i32, i32) {
    %c0_i32 = arith.constant 0 : i32
    %c0_i32_0 = arith.constant 0 : i32
    %c0_i32_1 = arith.constant 0 : i32
    return %c0_i32, %c0_i32_0 : i32, i32
  }
  func.func @transform_8(%arg0: i32) -> (i32, i32) {
    %c0_i32 = arith.constant 0 : i32
    %c0_i32_0 = arith.constant 0 : i32
    return %arg0, %c0_i32 : i32, i32
  }
}

</mosaic_0001>

<bundles_post_ra>
// kernel: squeeze.3
= control target key start
LH: loop header
LB: loop body
LE: loop exit
PB: predicated region body
PF: predicated region fallthrough
CT: control target
= control target key end

     0   :  { %vm18_vm0 = vcmask 785408   ;;  %s37_s8 = smov 80   ;;  %vm7_vm1 = vcmask 392192   ;;  %vm22_vm2 = vcmask 261120   ;;  %vm25_vm3 = vcmask 392448   ;;  %s54_s0 = inlined_call_operand.vmem [shape: f32[144], index: 0, kind: input, shape index: {}]   ;;  %s55_s1 = inlined_call_operand.vmem [shape: f32[3,48], index: 1, kind: output, shape index: {}]  }
   0x1   :  { %v4_v0 = vld [vmem:[%s54_s0] sm:$0x3]  ;;  %s36_s0 = smov 32  }
   0x2   :  { %5 = vst [vmem:[#allocation1] sm:$0x3] %v4_v0 }
   0x9   :  { %v15_v1 = vld [vmem:[#allocation1] sm:$0x1]   ;;  %v17_v2 = vld [vmem:[#allocation1 + $0x1] sm:$0x1]  }
   0xa   :  { %v19_v3 = vsel %vm18_vm0, %v17_v2, %v15_v1  ;;  %v9_v4 = vld [vmem:[#allocation1] sm:$0x1]  }
   0xb   :  { %20 = vrot.lane.b32.xlu0 %v19_v3, %s36_s0  ;;  %v6_v5 = vld [vmem:[#allocation1] sm:$0x1]  }
   0xc   :  { %8 = vst.msk [vmem:[#allocation0] sm:$0x1] %vm7_vm1, %v6_v5  }
  0x13   :  { %10 = vrot.lane.b32.xlu0 %v9_v4, %s37_s8 }
  0x7d   :  { %v21_v6 = vpop.permute.xlu0 %20  }
  0x7e   :  { %24 = vst.msk [vmem:[#allocation0 + $0x2] sm:$0x1] %vm22_vm2, %v21_v6  }
  0x7f   :  { %27 = vst.msk [vmem:[#allocation0 + $0x2] sm:$0x1] %vm25_vm3, %v21_v6  }
  0x85   :  { %v11_v7 = vpop.permute.xlu0 %10  }
  0x86   :  { %14 = vst.msk [vmem:[#allocation0 + $0x1] sm:$0x1] %vm7_vm1, %v11_v7  }
  0x8d   :  { %v30_v8 = vld [vmem:[#allocation0] sm:$0xf] }
  0x8e   :  { %33 = vst [vmem:[%s55_s1] sm:$0xf] %v30_v8 }

// kernel: _simple_model_loss.1
= control target key start
LH: loop header
LB: loop body
LE: loop exit
PB: predicated region body
PF: predicated region fallthrough
CT: control target
= control target key end

     0   :  { %s2113_s29 = smov 0   ;;  %s2981_s0 = inlined_call_operand.vmem [shape: f32[256,13], index: 0, kind: input, shape index: {}]   ;;  %s2982_s1 = inlined_call_operand.vmem [shape: s32[256,3], index: 1, kind: input, shape index: {}]   ;;  %s2983_s2 = inlined_call_operand.vmem [shape: f32[256,1], index: 2, kind: input, shape index: {}]   ;;  %s2984_s3 = inlined_call_operand.vmem [shape: f32[13,48], index: 3, kind: input, shape index: {}]   ;;  %s2985_s4 = inlined_call_operand.vmem [shape: f32[1,48], index: 4, kind: input, shape index: {}]   ;;  %s2986_s5 = inlined_call_operand.vmem [shape: f32[1,48], index: 5, kind: input, shape index: {}]   ;;  %s2987_s6 = inlined_call_operand.vmem [shape: f32[3,100], index: 6, kind: input, shape index: {}]   ;;  %s2988_s7 = inlined_call_operand.<no memory space> [shape: f32[1,1], index: 7, kind: input, shape index: {}]   ;;  %s2989_s8 = inlined_call_operand.vmem [shape: f32[16,128], index: 8, kind: output, shape index: {}]  }
   0x1   :  { %v13_v0 = vstv %s2988_s7 }
   0x2   :  { %14 = vst [vmem:[#allocation2] sm:$0x1] %v13_v0 }
   0x3 LB: > { %s2119_s30 = sadd.s32 4294967295, %s2059_s29   ;;  %p1792_p0 = scmp.ge.s32.totalorder %s2059_s29, 1  ;;  %s2059_s29 = sphi %s2113_s29, %s20_s29  }
   0x4   : > { %p287_p1 = scmp.lt.s32.totalorder %s2059_s29, 3 }
   0x6   : > { %p288_p2 = pnand %p1792_p0, %p287_p1 }
   0x7   : > { %s1793_s9 = sshll.u32 (!%p288_p2), %s2119_s30, 4  ;;  %p348_p4 = scmp.lt.s32.totalorder (!%p288_p2), %s2119_s30, 1 }
   0x8   : > { %291 = sbr.rel (%p288_p2) target bundleno = 838 (0x346), region = 52  ;;  %p331_p3 = scmp.lt.s32.totalorder (!%p288_p2), %s1793_s9, 31 }
   0xd   : > { %v369_v1 = vld [vmem:[%s2984_s3 + $0x8] sm:$0x1f]  ;;  %vm423_vm0 = vcmask 1044480   ;;  %v2061_v2 = vmov 0   ;;  %v368_v3 = vld [vmem:[%s2984_s3] sm:$0xff]  ;;  %s3013_s9 = smov (!%p331_p3, %s1793_s9), 31  ;;  %v613_v36 = vlaneseq }
   0xe   : > { %1905 = vset.pattern.permute.xlu0 %v2061_v2  ;;  %1904 = vset.pattern.permute.xlu2 %v2061_v2  ;;  %s2130_s13 = sshll.u32 %s3013_s9, 3  ;;  %vm374_vm1 = vcmask 105472   ;;  %v2246_v38 = vld [vmem:[%s2987_s6] ss:$0 sm:$0xff]  ;;  %v2062_v40 = vmov 0.0   ;;  %vm729_vm3 = vcmask 818176  }
   0xf   : > { %1903 = vset.pattern.permute.xlu1 %v2061_v2  ;;  %1885 = vmatpush.msk.msra.mxu3 %vm423_vm0, %v369_v1  ;;  %s2136_s16 = scalar_lea.vmem %s2982_s1, %s2130_s13  ;;  %s2151_s19 = scalar_lea.vmem %s2981_s0, %s2130_s13  ;;  %v2241_v37 = vand.u32 127, %v613_v36  ;;  %vm528_vm14 = vcmask 392192  }
  0x10   : > { %1800 = vmatpush.msk.msra.mxu0 %vm423_vm0, %v369_v1  ;;  %1884 = vmatpush.msk.msra.mxu2 %vm423_vm0, %v369_v1  ;;  %v2139_v4 = vld [vmem:[%s2136_s16 + $0x10] sm:$0xff]  ;;  %v2142_v5 = vld [vmem:[%s2136_s16 + $0x8] sm:$0xff]  ;;  %v2145_v6 = vld [vmem:[%s2136_s16] sm:$0xff]  ;;  %s2617_s11 = scalar_lea.vmem %s2983_s2, %s2130_s13  ;;  %s3015_s30 = smov (!%p348_p4, %s2119_s30), 1 }
  0x11   : > { %1888 = vmatpush.msra.mxu3 %v368_v3  ;;  %1883 = vmatpush.msk.msra.mxu1 %vm423_vm0, %v369_v1  ;;  %v364_v7 = vld [vmem:[%s2151_s19 + $0x60] sm:$0xff]  ;;  %v2165_v11 = vld [vmem:[%s2136_s16 + $0x48] sm:$0xff]  ;;  %v2168_v12 = vld [vmem:[%s2136_s16 + $0x18] sm:$0xff]  ;;  %s1799_s12 = sshll.u32 %s3015_s30, 3 }
  0x12   : > { %442 = vmatpush.msra.mxu0 %v368_v3  ;;  %1887 = vmatpush.msra.mxu2 %v368_v3  ;;  %v352_v8 = vld [vmem:[%s2151_s19] sm:$0xff]  ;;  %v365_v14 = vld [vmem:[%s2151_s19 + $0x68] sm:$0xff]  ;;  %v2191_v20 = vld [vmem:[%s2136_s16 + $0x30] sm:$0xff]  ;;  %s351_s15 = scalar_lea.vmem %s2989_s8, %s1799_s12 }
  0x13   : > { %1886 = vmatpush.msra.mxu1 %v368_v3  ;;  %622 = vperm.xlu0 %1905, %v2139_v4   ;;  %v360_v9 = vld [vmem:[%s2151_s19 + $0x40] sm:$0xff]  ;;  %v353_v15 = vld [vmem:[%s2151_s19 + $0x8] sm:$0xff]  ;;  %v366_v21 = vld [vmem:[%s2151_s19 + $0x70] sm:$0xff] }
  0x14   : > { %619 = vperm.xlu2 %1904, %v2142_v5   ;;  %616 = vperm.xlu1 %1903, %v2145_v6   ;;  %v356_v10 = vld [vmem:[%s2151_s19 + $0x20] sm:$0xff]  ;;  %v361_v16 = vld [vmem:[%s2151_s19 + $0x48] sm:$0xff]  ;;  %v354_v22 = vld [vmem:[%s2151_s19 + $0x10] sm:$0xff] }
  0x15   : > { %1813 = vmatmul.msk.f32.vlgmr.msra.gmra.mxu3 %vm374_vm1, %v364_v7  ;;  %1801 = vmatmul.msk.f32.vlgmr.msra.gmra.mxu0 %vm374_vm1, %v352_v8  ;;  %v2171_v13 = vld [vmem:[%s2136_s16 + $0x20] sm:$0xff]  ;;  %v357_v17 = vld [vmem:[%s2151_s19 + $0x28] sm:$0xff]  ;;  %v362_v23 = vld [vmem:[%s2151_s19 + $0x50] sm:$0xff] }
  0x16   : > { %1809 = vmatmul.msk.f32.vlgmr.msra.gmra.mxu2 %vm374_vm1, %v360_v9  ;;  %1805 = vmatmul.msk.f32.vlgmr.msra.gmra.mxu1 %vm374_vm1, %v356_v10  ;;  %v2185_v18 = vld [vmem:[%s2136_s16 + $0x60] sm:$0xff]  ;;  %v2188_v19 = vld [vmem:[%s2136_s16 + $0x28] sm:$0xff]  ;;  %v358_v24 = vld [vmem:[%s2151_s19 + $0x30] sm:$0xff] }
  0x17   : > { %v2205_v25 = vld [vmem:[%s2136_s16 + $0x78] sm:$0xff]  ;;  %v2211_v27 = vld [vmem:[%s2136_s16 + $0x40] sm:$0xff]  ;;  %v2225_v32 = vld [vmem:[%s2136_s16 + $0x50] sm:$0xff] }
  0x18   : > { %v2208_v26 = vld [vmem:[%s2136_s16 + $0x38] sm:$0xff]  ;;  %v2233_v34 = vld [vmem:[%s2136_s16 + $0x68] sm:$0xff]  ;;  %v2236_v35 = vld [vmem:[%s2136_s16 + $0x70] sm:$0xff] }
  0x19   : > { %v367_v28 = vld [vmem:[%s2151_s19 + $0x78] sm:$0xff] }
  0x1a   : > { %v355_v29 = vld [vmem:[%s2151_s19 + $0x18] sm:$0xff] }
  0x1b   : > { %643 = vperm.xlu0 %1905, %v2165_v11   ;;  %v363_v30 = vld [vmem:[%s2151_s19 + $0x58] sm:$0xff] }
  0x1c   : > { %625 = vperm.xlu2 %1904, %v2168_v12   ;;  %628 = vperm.xlu1 %1903, %v2171_v13   ;;  %v359_v31 = vld [vmem:[%s2151_s19 + $0x38] sm:$0xff] }
  0x1d   : > { %1814 = vmatmul.msk.f32.gmra.mxu3 %vm374_vm1, %v365_v14  ;;  %1802 = vmatmul.msk.f32.gmra.mxu0 %vm374_vm1, %v353_v15  ;;  %v2228_v33 = vld [vmem:[%s2136_s16 + $0x58] sm:$0xff] }
  0x1e   : > { %1810 = vmatmul.msk.f32.gmra.mxu2 %vm374_vm1, %v361_v16  ;;  %1806 = vmatmul.msk.f32.gmra.mxu1 %vm374_vm1, %v357_v17 }
  0x23   : > { %652 = vperm.xlu0 %1905, %v2185_v18  }
  0x24   : > { %631 = vperm.xlu2 %1904, %v2188_v19   ;;  %634 = vperm.xlu1 %1903, %v2191_v20  }
  0x25   : > { %1815 = vmatmul.msk.f32.gmra.mxu3 %vm374_vm1, %v366_v21  ;;  %1803 = vmatmul.msk.f32.gmra.mxu0 %vm374_vm1, %v354_v22 }
  0x26   : > { %1811 = vmatmul.msk.f32.gmra.mxu2 %vm374_vm1, %v362_v23  ;;  %1807 = vmatmul.msk.f32.gmra.mxu1 %vm374_vm1, %v358_v24  ;;  %v2285_v24 = vld [vmem:[%s2985_s4] ss:$0 sm:$0xff] }
  0x2b   : > { %661 = vperm.xlu0 %1905, %v2205_v25  }
  0x2c   : > { %637 = vperm.xlu2 %1904, %v2208_v26   ;;  %640 = vperm.xlu1 %1903, %v2211_v27  }
  0x2d   : > { %1816 = vmatmul.msk.f32.gmra.mxu3 %vm374_vm1, %v367_v28  ;;  %1804 = vmatmul.msk.f32.gmra.mxu0 %vm374_vm1, %v355_v29 }
  0x2e   : > { %1812 = vmatmul.msk.f32.gmra.mxu2 %vm374_vm1, %v363_v30  ;;  %1808 = vmatmul.msk.f32.gmra.mxu1 %vm374_vm1, %v359_v31 }
  0x34   : > { %646 = vperm.xlu2 %1904, %v2225_v32   ;;  %649 = vperm.xlu1 %1903, %v2228_v33  }
  0x3c   : > { %655 = vperm.xlu2 %1904, %v2233_v34   ;;  %658 = vperm.xlu1 %1903, %v2236_v35  }
  0x6e   : > { %v620_v39 = vpop.permute.xlu2 %619 }
  0x6f   : > { %vm664_vm2 = vcmp.eq.s32.totalorder %v2241_v37, %v620_v39 }
  0x70   : > { %v1818_v41 = vsel %vm664_vm2, 1.0, %v2062_v40 }
  0x71   : > { %v714_v42 = vmul.f32 %v2246_v38, %v1818_v41 }
  0x73   : > { %v733_v43 = vsel %vm729_vm3, %v714_v42, 0.0 }
  0x74   : > { %734 = vadd.xlane.f32.xlu1 %v733_v43 }
  0x76   : > { %v626_v44 = vpop.permute.xlu2 %625 }
  0x77   : > { %vm666_vm6 = vcmp.eq.s32.totalorder %v2241_v37, %v626_v44 }
  0x78   : > { %v1820_v54 = vsel %vm666_vm6, 1.0, %v2062_v40 }
  0x79   : > { %v716_v57 = vmul.f32 %v2246_v38, %v1820_v54 }
  0x7b   : > { %v739_v61 = vsel %vm729_vm3, %v716_v57, 0.0 }
  0x7e   : > { %v632_v45 = vpop.permute.xlu2 %631 }
  0x7f   : > { %vm668_vm8 = vcmp.eq.s32.totalorder %v2241_v37, %v632_v45 }
  0x80   : > { %v1822_v63 = vsel %vm668_vm8, 1.0, %v2062_v40 }
  0x81   : > { %v718_v7 = vmul.f32 %v2246_v38, %v1822_v63 }
  0x83   : > { %v745_v21 = vsel %vm729_vm3, %v718_v7, 0.0 }
  0x85   : > { %v623_v46 = vpop.permute.xlu0 %622 }
  0x86   : > { %vm665_vm4 = vcmp.eq.s32.totalorder %v2241_v37, %v623_v46  ;;  %v617_v47 = vpop.permute.xlu1 %616  ;;  %v638_v55 = vpop.permute.xlu2 %637 }
  0x87   : > { %v1819_v48 = vsel %vm665_vm4, 1.0, %v2062_v40  ;;  %vm663_vm5 = vcmp.eq.s32.totalorder %v2241_v37, %v617_v47  ;;  %vm670_vm9 = vcmp.eq.s32.totalorder %v2241_v37, %v638_v55 }
  0x88   : > { %v1817_v49 = vsel %vm663_vm5, 1.0, %v2062_v40  ;;  %v715_v50 = vmul.f32 %v2246_v38, %v1819_v48  ;;  %v1824_v0 = vsel %vm670_vm9, 1.0, %v2062_v40 }
  0x89   : > { %v713_v51 = vmul.f32 %v2246_v38, %v1817_v49  ;;  %v720_v8 = vmul.f32 %v2246_v38, %v1824_v0 }
  0x8a   : > { %v736_v52 = vsel %vm729_vm3, %v715_v50, 0.0 }
  0x8b   : > { %v730_v53 = vsel %vm729_vm3, %v713_v51, 0.0  ;;  %737 = vadd.xlane.f32.xlu0 %v736_v52  ;;  %v751_v22 = vsel %vm729_vm3, %v720_v8, 0.0 }
  0x8c   : > { %731 = vadd.xlane.f32.xlu2 %v730_v53  ;;  %v2302_v53 = vld [vmem:[%s2986_s5] ss:$0 sm:$0xff] }
  0x8d   : > { %v644_v3 = vpop.permute.xlu0 %643 }
  0x8e   : > { %v629_v56 = vpop.permute.xlu1 %628  ;;  %v647_v1 = vpop.permute.xlu2 %646  ;;  %vm672_vm12 = vcmp.eq.s32.totalorder %v2241_v37, %v644_v3 }
  0x8f   : > { %vm667_vm7 = vcmp.eq.s32.totalorder %v2241_v37, %v629_v56  ;;  %vm673_vm11 = vcmp.eq.s32.totalorder %v2241_v37, %v647_v1  ;;  %v1826_v29 = vsel %vm672_vm12, 1.0, %v2062_v40 }
  0x90   : > { %v1821_v58 = vsel %vm667_vm7, 1.0, %v2062_v40  ;;  %v1827_v28 = vsel %vm673_vm11, 1.0, %v2062_v40  ;;  %v722_v44 = vmul.f32 %v2246_v38, %v1826_v29 }
  0x91   : > { %v717_v59 = vmul.f32 %v2246_v38, %v1821_v58  ;;  %v723_v39 = vmul.f32 %v2246_v38, %v1827_v28 }
  0x92   : > { %v444_v60 = vpop.f32.mrf.mxu0  ;;  %v757_v55 = vsel %vm729_vm3, %v722_v44, 0.0 }
  0x93   : > { %v742_v62 = vsel %vm729_vm3, %v717_v59, 0.0  ;;  %v456_v17 = vpop.f32.mrf.mxu1  ;;  %v445_v42 = vadd.f32 %v2285_v24, %v444_v60  ;;  %v760_v51 = vsel %vm729_vm3, %v723_v39, 0.0 }
  0x94   : > { %740 = vadd.xlane.f32.xlu2 %v739_v61  ;;  %743 = vadd.xlane.f32.xlu1 %v742_v62  ;;  %v457_v30 = vadd.f32 %v2285_v24, %v456_v17 }
  0x95   : > { %v492_v54 = vmax.f32 %v445_v42, 0.0 }
  0x96   : > { %v635_v2 = vpop.permute.xlu1 %634  ;;  %v496_v48 = vmax.f32 %v457_v30, 0.0 }
  0x97   : > { %vm669_vm10 = vcmp.eq.s32.totalorder %v2241_v37, %v635_v2  ;;  %v512_v62 = vmul.f32 %v2302_v53, %v492_v54 }
  0x98   : > { %v480_v9 = vpop.f32.mrf.mxu3  ;;  %v1823_v10 = vsel %vm669_vm10, 1.0, %v2062_v40  ;;  %v516_v57 = vmul.f32 %v2302_v53, %v496_v48 }
  0x99   : > { %v468_v14 = vpop.f32.mrf.mxu2  ;;  %v719_v15 = vmul.f32 %v2246_v38, %v1823_v10  ;;  %v481_v61 = vadd.f32 %v2285_v24, %v480_v9  ;;  %v529_v8 = vsel %vm528_vm14, %v512_v62, 0.0 }
  0x9a   : > { %v447_v16 = vpop.f32.mrf.mxu0  ;;  %v469_v60 = vadd.f32 %v2285_v24, %v468_v14  ;;  %v541_v0 = vsel %vm528_vm14, %v516_v57, 0.0 }
  0x9b   : > { %v748_v23 = vsel %vm729_vm3, %v719_v15, 0.0  ;;  %v459_v59 = vpop.f32.mrf.mxu1  ;;  %v504_v7 = vmax.f32 %v481_v61, 0.0  ;;  %v448_v17 = vadd.f32 %v2285_v24, %v447_v16 }
  0x9c   : > { %746 = vadd.xlane.f32.xlu2 %v745_v21  ;;  %752 = vadd.xlane.f32.xlu1 %v751_v22  ;;  %v500_v3 = vmax.f32 %v469_v60, 0.0  ;;  %v460_v10 = vadd.f32 %v2285_v24, %v459_v59 }
  0x9d   : > { %749 = vadd.xlane.f32.xlu0 %v748_v23  ;;  %v524_v21 = vmul.f32 %v2302_v53, %v504_v7  ;;  %v493_v39 = vmax.f32 %v448_v17, 0.0  ;;  %v653_v17 = vpop.permute.xlu0 %652 }
  0x9e   : > { %v641_v31 = vpop.permute.xlu1 %640  ;;  %v520_v15 = vmul.f32 %v2302_v53, %v500_v3  ;;  %v497_v23 = vmax.f32 %v460_v10, 0.0  ;;  %vm675_vm1 = vcmp.eq.s32.totalorder %v2241_v37, %v653_v17 }
  0x9f   : > { %vm671_vm13 = vcmp.eq.s32.totalorder %v2241_v37, %v641_v31 }
  0xa0   : > { %v483_v41 = vpop.f32.mrf.mxu3  ;;  %v1825_v43 = vsel %vm671_vm13, 1.0, %v2062_v40  ;;  %v553_v31 = vsel %vm528_vm14, %v520_v15, 0.0  ;;  %v517_v42 = vmul.f32 %v2302_v53, %v497_v23  ;;  %v2063_v15 = vmov 1  }
  0xa1   : > { %v484_v45 = vadd.f32 %v2285_v24, %v483_v41  ;;  %v471_v46 = vpop.f32.mrf.mxu2  ;;  %v721_v47 = vmul.f32 %v2246_v38, %v1825_v43  ;;  %v565_v41 = vsel %vm528_vm14, %v524_v21, 0.0  ;;  %1906 = vset.pattern.permute.xlu1 %v2063_v15  ;;  %1907 = vset.pattern.permute.xlu2 %v2063_v15 }
  0xa2   : > { %v450_v50 = vpop.f32.mrf.mxu0  ;;  %v544_v48 = vsel %vm528_vm14, %v517_v42, 0.0 }
  0xa3   : > { %v505_v49 = vmax.f32 %v484_v45, 0.0  ;;  %v754_v52 = vsel %vm729_vm3, %v721_v47, 0.0  ;;  %v451_v58 = vadd.f32 %v2285_v24, %v450_v50  ;;  %v462_v22 = vpop.f32.mrf.mxu1  ;;  %v472_v45 = vadd.f32 %v2285_v24, %v471_v46 }
  0xa4   : > { %761 = vadd.xlane.f32.xlu1 %v760_v51  ;;  %755 = vadd.xlane.f32.xlu2 %v754_v52  ;;  %v513_v47 = vmul.f32 %v2302_v53, %v493_v39  ;;  %v463_v60 = vadd.f32 %v2285_v24, %v462_v22  ;;  %v1829_v39 = vsel %vm675_vm1, 1.0, %v2062_v40 }
  0xa5   : > { %758 = vadd.xlane.f32.xlu0 %v757_v55  ;;  %v525_v56 = vmul.f32 %v2302_v53, %v505_v49  ;;  %v494_v1 = vmax.f32 %v451_v58, 0.0  ;;  %v501_v55 = vmax.f32 %v472_v45, 0.0 }
  0xa6   : > { %v650_v44 = vpop.permute.xlu1 %649  ;;  %v498_v3 = vmax.f32 %v463_v60, 0.0 }
  0xa7   : > { %v568_v63 = vsel %vm528_vm14, %v525_v56, 0.0  ;;  %v514_v14 = vmul.f32 %v2302_v53, %v494_v1  ;;  %vm674_vm15 = vcmp.eq.s32.totalorder %v2241_v37, %v650_v44  ;;  %v532_v56 = vsel %vm528_vm14, %v513_v47, 0.0 }
  0xa8   : > { %v486_v52 = vpop.f32.mrf.mxu3  ;;  %v1828_v54 = vsel %vm674_vm15, 1.0, %v2062_v40  ;;  %v521_v61 = vmul.f32 %v2302_v53, %v501_v55  ;;  %v518_v21 = vmul.f32 %v2302_v53, %v498_v3  ;;  %v725_v44 = vmul.f32 %v2246_v38, %v1829_v39 }
  0xa9   : > { %v474_v2 = vpop.f32.mrf.mxu2  ;;  %v535_v29 = vsel %vm528_vm14, %v514_v14, 0.0  ;;  %v487_v57 = vadd.f32 %v2285_v24, %v486_v52  ;;  %v724_v59 = vmul.f32 %v2246_v38, %v1828_v54  ;;  %v656_v14 = vpop.permute.xlu2 %655 }
  0xaa   : > { %v475_v9 = vadd.f32 %v2285_v24, %v474_v2  ;;  %v453_v30 = vpop.f32.mrf.mxu0  ;;  %v556_v7 = vsel %vm528_vm14, %v521_v61, 0.0  ;;  %vm676_vm0 = vcmp.eq.s32.totalorder %v2241_v37, %v656_v14  ;;  %v662_v52 = vpop.permute.xlu0 %661 }
  0xab   : > { %v454_v16 = vadd.f32 %v2285_v24, %v453_v30  ;;  %v465_v51 = vpop.f32.mrf.mxu1  ;;  %v763_v2 = vsel %vm729_vm3, %v724_v59, 0.0  ;;  %v1830_v30 = vsel %vm676_vm0, 1.0, %v2062_v40  ;;  %vm678_vm4 = vcmp.eq.s32.totalorder %v2241_v37, %v662_v52 }
  0xac   : > { %569 = vadd.xlane.f32.xlu1 %v568_v63  ;;  %542 = vadd.xlane.f32.xlu2 %v541_v0  ;;  %v502_v28 = vmax.f32 %v475_v9, 0.0  ;;  %v466_v46 = vadd.f32 %v2285_v24, %v465_v51  ;;  %v506_v63 = vmax.f32 %v487_v57, 0.0  ;;  %v2064_v51 = vmov 2  }
  0xad   : > { %530 = vadd.xlane.f32.xlu0 %v529_v8  ;;  %v495_v49 = vmax.f32 %v454_v16, 0.0 }
  0xae   : > { %v522_v43 = vmul.f32 %v2302_v53, %v502_v28  ;;  %v499_v62 = vmax.f32 %v466_v46, 0.0  ;;  %v526_v10 = vmul.f32 %v2302_v53, %v506_v63  ;;  %v659_v42 = vpop.permute.xlu1 %658  ;;  %1908 = vset.pattern.permute.xlu0 %v2064_v51  ;;  %v1832_v46 = vsel %vm678_vm4, 1.0, %v2062_v40 }
  0xaf   : > { %v515_v58 = vmul.f32 %v2302_v53, %v495_v49  ;;  %vm677_vm2 = vcmp.eq.s32.totalorder %v2241_v37, %v659_v42  ;;  %v728_v57 = vmul.f32 %v2246_v38, %v1832_v46 }
  0xb0   : > { %v559_v50 = vsel %vm528_vm14, %v522_v43, 0.0  ;;  %v519_v9 = vmul.f32 %v2302_v53, %v499_v62  ;;  %v571_v23 = vsel %vm528_vm14, %v526_v10, 0.0  ;;  %v726_v43 = vmul.f32 %v2246_v38, %v1830_v30 }
  0xb1   : > { %v538_v0 = vsel %vm528_vm14, %v515_v58, 0.0  ;;  %v477_v1 = vpop.f32.mrf.mxu2  ;;  %v1831_v49 = vsel %vm677_vm2, 1.0, %v2062_v40 }
  0xb2   : > { %v478_v8 = vadd.f32 %v2285_v24, %v477_v1  ;;  %v550_v28 = vsel %vm528_vm14, %v519_v9, 0.0  ;;  %v727_v54 = vmul.f32 %v2246_v38, %v1831_v49 }
  0xb4   : > { %554 = vadd.xlane.f32.xlu2 %v553_v31  ;;  %536 = vadd.xlane.f32.xlu1 %v535_v29  ;;  %v503_v22 = vmax.f32 %v478_v8, 0.0  ;;  %v489_v29 = vpop.f32.mrf.mxu3  ;;  %v547_v31 = vsel %vm528_vm14, %v518_v21, 0.0 }
  0xb5   : > { %566 = vadd.xlane.f32.xlu0 %v565_v41  ;;  %v490_v16 = vadd.f32 %v2285_v24, %v489_v29 }
  0xb6   : > { %v523_v41 = vmul.f32 %v2302_v53, %v503_v22 }
  0xb7   : > { %v507_v47 = vmax.f32 %v490_v16, 0.0 }
  0xb8   : > { %v562_v45 = vsel %vm528_vm14, %v523_v41, 0.0 }
  0xb9   : > { %v527_v24 = vmul.f32 %v2302_v53, %v507_v47  ;;  %v775_v53 = vsel %vm729_vm3, %v728_v57, 0.0 }
  0xbb   : > { %v574_v55 = vsel %vm528_vm14, %v527_v24, 0.0 }
  0xbc   : > { %545 = vadd.xlane.f32.xlu2 %v544_v48  ;;  %560 = vadd.xlane.f32.xlu1 %v559_v50  ;;  %v769_v48 = vsel %vm729_vm3, %v726_v43, 0.0  ;;  %v766_v50 = vsel %vm729_vm3, %v725_v44, 0.0 }
  0xbd   : > { %533 = vadd.xlane.f32.xlu0 %v532_v56  ;;  %v772_v56 = vsel %vm729_vm3, %v727_v54, 0.0 }
  0xc4   : > { %764 = vadd.xlane.f32.xlu2 %v763_v2  ;;  %539 = vadd.xlane.f32.xlu1 %v538_v0  ;;  %v2392_v2 = vld [vmem:[#allocation2] ss:$0 sm:$0xff] }
  0xc5   : > { %557 = vadd.xlane.f32.xlu0 %v556_v7 }
  0xcc   : > { %572 = vadd.xlane.f32.xlu2 %v571_v23  ;;  %551 = vadd.xlane.f32.xlu1 %v550_v28 }
  0xcd   : > { %548 = vadd.xlane.f32.xlu0 %v547_v31 }
  0xd4   : > { %563 = vadd.xlane.f32.xlu2 %v562_v45  ;;  %770 = vadd.xlane.f32.xlu1 %v769_v48 }
  0xd5   : > { %767 = vadd.xlane.f32.xlu0 %v766_v50 }
  0xdc   : > { %773 = vadd.xlane.f32.xlu2 %v772_v56 }
  0xdd   : > { %575 = vadd.xlane.f32.xlu0 %v574_v55 }
  0xe5   : > { %776 = vadd.xlane.f32.xlu0 %v775_v53 }
  0xe7   : > { %v735_v58 = vpop.xlane.xlu1 %734 }
  0xed   : > { %795 = vperm.xlu1 %1906, %v2145_v6  }
  0xf4   : > { %798 = vperm.xlu2 %1907, %v2142_v5  }
  0xf5   : > { %804 = vperm.xlu1 %1906, %v2168_v12  }
  0xf9   : > { %973 = vperm.xlu0 %1908, %v2145_v6  }
  0xfc   : > { %807 = vperm.xlu2 %1907, %v2171_v13  }
  0xfd   : > { %810 = vperm.xlu1 %1906, %v2188_v19  }
  0xfe   : > { %v738_v38 = vpop.xlane.xlu0 %737 }
  0xff   : > { %v732_v59 = vpop.xlane.xlu2 %731 }
 0x101   : > { %988 = vperm.xlu0 %1908, %v2188_v19  }
 0x104   : > { %813 = vperm.xlu2 %1907, %v2191_v20  }
 0x105   : > { %816 = vperm.xlu1 %1906, %v2208_v26  }
 0x107   : > { %v741_v60 = vpop.xlane.xlu2 %740  ;;  %v744_v61 = vpop.xlane.xlu1 %743 }
 0x109   : > { %1003 = vperm.xlu0 %1908, %v2225_v32  }
 0x10c   : > { %819 = vperm.xlu2 %1907, %v2211_v27  }
 0x10d   : > { %1909 = vset.pattern.permute.xlu1 %v2064_v51 }
 0x10e   : > { %976 = vperm.xlu1 %1909, %v2142_v5  }
 0x10f   : > { %v747_v6 = vpop.xlane.xlu2 %746  ;;  %v753_v62 = vpop.xlane.xlu1 %752 }
 0x110   : > { %v750_v63 = vpop.xlane.xlu0 %749 }
 0x111   : > { %1912 = vset.pattern.permute.xlu0 %v2063_v15 }
 0x112   : > { %801 = vperm.xlu0 %1912, %v2139_v4  }
 0x114   : > { %1910 = vset.pattern.permute.xlu2 %v2064_v51 }
 0x115   : > { %979 = vperm.xlu2 %1910, %v2139_v4  }
 0x116   : > { %982 = vperm.xlu1 %1909, %v2168_v12  }
 0x117   : > { %v756_v19 = vpop.xlane.xlu2 %755  ;;  %v762_v0 = vpop.xlane.xlu1 %761 }
 0x118   : > { %v759_v1 = vpop.xlane.xlu0 %758 }
 0x11a   : > { %822 = vperm.xlu0 %1912, %v2165_v11  }
 0x11d   : > { %985 = vperm.xlu2 %1910, %v2171_v13  }
 0x11e   : > { %991 = vperm.xlu1 %1909, %v2191_v20  }
 0x11f   : > { %v570_v5 = vpop.xlane.xlu1 %569  ;;  %v543_v3 = vpop.xlane.xlu2 %542 }
 0x120   : > { %v585_v7 = vadd.f32 %v2392_v2, %v543_v3  ;;  %v531_v8 = vpop.xlane.xlu0 %530  ;;  %v594_v55 = vadd.f32 %v2392_v2, %v570_v5 }
 0x121   : > { %v581_v4 = vadd.f32 %v2392_v2, %v531_v8 }
 0x122   : > { %837 = vperm.xlu0 %1912, %v2236_v35   ;;  %v2399_v12 = vadd.f32 %v744_v61, %v585_v7 }
 0x123   : > { %v2401_v10 = vadd.f32 %v732_v59, %v581_v4 }
 0x125   : > { %994 = vperm.xlu2 %1910, %v2208_v26  }
 0x126   : > { %997 = vperm.xlu1 %1909, %v2211_v27  }
 0x127   : > { %v555_v13 = vpop.xlane.xlu2 %554  ;;  %v537_v9 = vpop.xlane.xlu1 %536 }
 0x128   : > { %v589_v20 = vadd.f32 %v2392_v2, %v555_v13  ;;  %v583_v14 = vadd.f32 %v2392_v2, %v537_v9  ;;  %v567_v17 = vpop.xlane.xlu0 %566 }
 0x129   : > { %v593_v56 = vadd.f32 %v2392_v2, %v567_v17 }
 0x12a   : > { %v2407_v21 = vadd.f32 %v738_v38, %v583_v14  ;;  %v2409_v22 = vadd.f32 %v756_v19, %v589_v20  ;;  %1918 = vset.pattern.permute.xlu0 %v2064_v51 }
 0x12d   : > { %1911 = vset.pattern.permute.xlu2 %v2063_v15 }
 0x12e   : > { %825 = vperm.xlu2 %1911, %v2225_v32   ;;  %1000 = vperm.xlu1 %1909, %v2165_v11  }
 0x12f   : > { %v546_v26 = vpop.xlane.xlu2 %545  ;;  %v561_v27 = vpop.xlane.xlu1 %560 }
 0x130   : > { %v586_v23 = vadd.f32 %v2392_v2, %v546_v26  ;;  %v591_v28 = vadd.f32 %v2392_v2, %v561_v27  ;;  %v534_v29 = vpop.xlane.xlu0 %533 }
 0x131   : > { %v582_v30 = vadd.f32 %v2392_v2, %v534_v29 }
 0x132   : > { %v2418_v31 = vadd.f32 %v747_v6, %v586_v23  ;;  %v2420_v39 = vadd.f32 %v762_v0, %v591_v28 }
 0x133   : > { %v2422_v41 = vadd.f32 %v735_v58, %v582_v30 }
 0x136   : > { %828 = vperm.xlu2 %1911, %v2228_v33   ;;  %1913 = vset.pattern.permute.xlu1 %v2063_v15 }
 0x137   : > { %v765_v11 = vpop.xlane.xlu2 %764  ;;  %831 = vperm.xlu1 %1913, %v2185_v18   ;;  %v540_v32 = vpop.xlane.xlu1 %539 }
 0x138   : > { %v584_v42 = vadd.f32 %v2392_v2, %v540_v32  ;;  %v558_v16 = vpop.xlane.xlu0 %557 }
 0x139   : > { %v590_v43 = vadd.f32 %v2392_v2, %v558_v16 }
 0x13a   : > { %v2429_v44 = vadd.f32 %v741_v60, %v584_v42 }
 0x13b   : > { %v2431_v45 = vadd.f32 %v759_v1, %v590_v43 }
 0x13e   : > { %1914 = vset.pattern.permute.xlu2 %v2064_v51 }
 0x13f   : > { %1006 = vperm.xlu2 %1914, %v2228_v33   ;;  %v573_v47 = vpop.xlane.xlu2 %572  ;;  %834 = vperm.xlu1 %1913, %v2233_v34   ;;  %v552_v48 = vpop.xlane.xlu1 %551 }
 0x140   : > { %v588_v49 = vadd.f32 %v2392_v2, %v552_v48  ;;  %v549_v50 = vpop.xlane.xlu0 %548  ;;  %v595_v60 = vadd.f32 %v2392_v2, %v573_v47 }
 0x141   : > { %v587_v24 = vadd.f32 %v2392_v2, %v549_v50 }
 0x142   : > { %v2438_v52 = vadd.f32 %v753_v62, %v588_v49 }
 0x143   : > { %v2440_v54 = vadd.f32 %v750_v63, %v587_v24 }
 0x147   : > { %1009 = vperm.xlu2 %1914, %v2185_v18   ;;  %v564_v33 = vpop.xlane.xlu2 %563  ;;  %1915 = vset.pattern.permute.xlu1 %v2064_v51  ;;  %v771_v46 = vpop.xlane.xlu1 %770 }
 0x148   : > { %v592_v57 = vadd.f32 %v2392_v2, %v564_v33  ;;  %v2447_v53 = vadd.f32 %v771_v46, %v594_v55  ;;  %v768_v58 = vpop.xlane.xlu0 %767  ;;  %1012 = vperm.xlu1 %1915, %v2233_v34  }
 0x149   : > { %v2450_v59 = vadd.f32 %v768_v58, %v593_v56 }
 0x14a   : > { %v2452_v38 = vadd.f32 %v765_v11, %v592_v57 }
 0x14f   : > { %v774_v61 = vpop.xlane.xlu2 %773  ;;  %1916 = vset.pattern.permute.xlu2 %v2063_v15 }
 0x150   : > { %v2456_v18 = vadd.f32 %v774_v61, %v595_v60  ;;  %v576_v6 = vpop.xlane.xlu0 %575  ;;  %1015 = vperm.xlu1 %1915, %v2236_v35   ;;  %840 = vperm.xlu2 %1916, %v2205_v25   ;;  %v2469_v35 = vld [vmem:[%s2987_s6 + $0x1] ss:$0 sm:$0xff] }
 0x151   : > { %v596_v62 = vadd.f32 %v2392_v2, %v576_v6 }
 0x157   : > { %v799_v63 = vpop.permute.xlu2 %798 }
 0x158   : > { %v777_v34 = vpop.xlane.xlu0 %776  ;;  %1917 = vset.pattern.permute.xlu2 %v2064_v51  ;;  %vm843_vm7 = vcmp.eq.s32.totalorder %v2241_v37, %v799_v63 }
 0x159   : > { %v2462_v19 = vadd.f32 %v777_v34, %v596_v62  ;;  %1018 = vperm.xlu2 %1917, %v2205_v25   ;;  %v2479_v25 = vld [vmem:[%s2987_s6 + $0x2] ss:$0 sm:$0xff]  ;;  %v1834_v14 = vsel %vm843_vm7, 1.0, %v2062_v40 }
 0x15a   : > { %v893_v26 = vmul.f32 %v2469_v35, %v1834_v14 }
 0x15c   : > { %v911_v29 = vsel %vm729_vm3, %v893_v26, 0.0 }
 0x15f   : > { %v808_v0 = vpop.permute.xlu2 %807  ;;  %v796_v1 = vpop.permute.xlu1 %795 }
 0x160   : > { %vm842_vm5 = vcmp.eq.s32.totalorder %v2241_v37, %v796_v1  ;;  %vm846_vm12 = vcmp.eq.s32.totalorder %v2241_v37, %v808_v0 }
 0x161   : > { %v1833_v15 = vsel %vm842_vm5, 1.0, %v2062_v40  ;;  %v1837_v33 = vsel %vm846_vm12, 1.0, %v2062_v40 }
 0x162   : > { %v892_v2 = vmul.f32 %v2469_v35, %v1833_v15  ;;  %v896_v62 = vmul.f32 %v2469_v35, %v1837_v33 }
 0x164   : > { %v908_v5 = vsel %vm729_vm3, %v892_v2, 0.0  ;;  %v920_v1 = vsel %vm729_vm3, %v896_v62, 0.0 }
 0x165   : > { %909 = vadd.xlane.f32.xlu0 %v908_v5 }
 0x167   : > { %v2474_v51 = vpop.permute.xlu2 %813  ;;  %v805_v3 = vpop.permute.xlu1 %804 }
 0x168   : > { %vm845_vm14 = vcmp.eq.s32.totalorder %v2241_v37, %v805_v3  ;;  %vm848_vm4 = vcmp.eq.s32.totalorder %v2241_v37, %v2474_v51 }
 0x169   : > { %v1836_v63 = vsel %vm845_vm14, 1.0, %v2062_v40 }
 0x16a   : > { %v895_v15 = vmul.f32 %v2469_v35, %v1836_v63 }
 0x16b   : > { %v974_v7 = vpop.permute.xlu0 %973 }
 0x16c   : > { %vm1020_vm6 = vcmp.eq.s32.totalorder %v2241_v37, %v974_v7 }
 0x16d   : > { %v1849_v8 = vsel %vm1020_vm6, 1.0, %v2062_v40 }
 0x16e   : > { %v1070_v4 = vmul.f32 %v2479_v25, %v1849_v8  ;;  %v917_v8 = vsel %vm729_vm3, %v895_v15, 0.0 }
 0x16f   : > { %v820_v13 = vpop.permute.xlu2 %819  ;;  %v811_v9 = vpop.permute.xlu1 %810 }
 0x170   : > { %v1086_v20 = vsel %vm729_vm3, %v1070_v4, 0.0  ;;  %vm847_vm9 = vcmp.eq.s32.totalorder %v2241_v37, %v811_v9  ;;  %vm850_vm15 = vcmp.eq.s32.totalorder %v2241_v37, %v820_v13 }
 0x171   : > { %1087 = vadd.xlane.f32.xlu0 %v1086_v20  ;;  %v1838_v42 = vsel %vm847_vm9, 1.0, %v2062_v40  ;;  %v1841_v0 = vsel %vm850_vm15, 1.0, %v2062_v40 }
 0x172   : > { %v897_v47 = vmul.f32 %v2469_v35, %v1838_v42  ;;  %v900_v7 = vmul.f32 %v2469_v35, %v1841_v0 }
 0x173   : > { %v989_v17 = vpop.permute.xlu0 %988 }
 0x174   : > { %vm1025_vm11 = vcmp.eq.s32.totalorder %v2241_v37, %v989_v17  ;;  %v923_v24 = vsel %vm729_vm3, %v897_v47, 0.0  ;;  %v932_v9 = vsel %vm729_vm3, %v900_v7, 0.0 }
 0x175   : > { %v1854_v55 = vsel %vm1025_vm11, 1.0, %v2062_v40 }
 0x176   : > { %v1075_v61 = vmul.f32 %v2479_v25, %v1854_v55 }
 0x177   : > { %v980_v27 = vpop.permute.xlu2 %979  ;;  %v817_v23 = vpop.permute.xlu1 %816 }
 0x178   : > { %vm1022_vm8 = vcmp.eq.s32.totalorder %v2241_v37, %v980_v27  ;;  %v1101_v34 = vsel %vm729_vm3, %v1075_v61, 0.0  ;;  %vm849_vm2 = vcmp.eq.s32.totalorder %v2241_v37, %v817_v23 }
 0x179   : > { %v1851_v28 = vsel %vm1022_vm8, 1.0, %v2062_v40  ;;  %v1840_v17 = vsel %vm849_vm2, 1.0, %v2062_v40 }
 0x17a   : > { %912 = vadd.xlane.f32.xlu1 %v911_v29  ;;  %v1072_v30 = vmul.f32 %v2479_v25, %v1851_v28  ;;  %v899_v23 = vmul.f32 %v2469_v35, %v1840_v17  ;;  %v1839_v29 = vsel %vm848_vm4, 1.0, %v2062_v40 }
 0x17b   : > { %v2493_v11 = vpop.permute.xlu0 %1003 }
 0x17c   : > { %v1092_v32 = vsel %vm729_vm3, %v1072_v30, 0.0  ;;  %v929_v51 = vsel %vm729_vm3, %v899_v23, 0.0  ;;  %vm1030_vm12 = vcmp.eq.s32.totalorder %v2241_v37, %v2493_v11 }
 0x17d   : > { %1093 = vadd.xlane.f32.xlu0 %v1092_v32 }
 0x17f   : > { %v986_v16 = vpop.permute.xlu2 %985 }
 0x180   : > { %v977_v43 = vpop.permute.xlu1 %976  ;;  %vm1024_vm0 = vcmp.eq.s32.totalorder %v2241_v37, %v986_v16  ;;  %v898_v16 = vmul.f32 %v2469_v35, %v1839_v29 }
 0x181   : > { %vm1021_vm10 = vcmp.eq.s32.totalorder %v2241_v37, %v977_v43  ;;  %v1853_v2 = vsel %vm1024_vm0, 1.0, %v2062_v40 }
 0x182   : > { %v1850_v48 = vsel %vm1021_vm10, 1.0, %v2062_v40  ;;  %v1074_v4 = vmul.f32 %v2479_v25, %v1853_v2 }
 0x183   : > { %v1071_v49 = vmul.f32 %v2479_v25, %v1850_v48 }
 0x184   : > { %v802_v50 = vpop.permute.xlu0 %801  ;;  %v1098_v20 = vsel %vm729_vm3, %v1074_v4, 0.0 }
 0x185   : > { %vm844_vm13 = vcmp.eq.s32.totalorder %v2241_v37, %v802_v50  ;;  %924 = vadd.xlane.f32.xlu0 %v923_v24  ;;  %v1089_v56 = vsel %vm729_vm3, %v1071_v49, 0.0  ;;  %v926_v24 = vsel %vm729_vm3, %v898_v16, 0.0 }
 0x186   : > { %v1835_v46 = vsel %vm844_vm13, 1.0, %v2062_v40  ;;  %1090 = vadd.xlane.f32.xlu1 %v1089_v56 }
 0x187   : > { %v995_v57 = vpop.permute.xlu2 %994  ;;  %v894_v58 = vmul.f32 %v2469_v35, %v1835_v46 }
 0x188   : > { %v983_v60 = vpop.permute.xlu1 %982  ;;  %vm1027_vm6 = vcmp.eq.s32.totalorder %v2241_v37, %v995_v57 }
 0x189   : > { %v914_v6 = vsel %vm729_vm3, %v894_v58, 0.0  ;;  %vm1023_vm1 = vcmp.eq.s32.totalorder %v2241_v37, %v983_v60  ;;  %v1856_v43 = vsel %vm1027_vm6, 1.0, %v2062_v40 }
 0x18a   : > { %915 = vadd.xlane.f32.xlu2 %v914_v6  ;;  %v1852_v13 = vsel %vm1023_vm1, 1.0, %v2062_v40  ;;  %v1077_v55 = vmul.f32 %v2479_v25, %v1856_v43 }
 0x18b   : > { %v1073_v14 = vmul.f32 %v2479_v25, %v1852_v13 }
 0x18c   : > { %v823_v47 = vpop.permute.xlu0 %822  ;;  %v1107_v46 = vsel %vm729_vm3, %v1077_v55, 0.0 }
 0x18d   : > { %1102 = vadd.xlane.f32.xlu0 %v1101_v34  ;;  %v1095_v28 = vsel %vm729_vm3, %v1073_v14, 0.0  ;;  %vm851_vm11 = vcmp.eq.s32.totalorder %v2241_v37, %v823_v47 }
 0x18e   : > { %921 = vadd.xlane.f32.xlu1 %v920_v1  ;;  %v1842_v1 = vsel %vm851_vm11, 1.0, %v2062_v40  ;;  %vm1662_vm11 = vcmask 7168  }
 0x18f   : > { %v826_v5 = vpop.permute.xlu2 %825 }
 0x190   : > { %v992_v3 = vpop.permute.xlu1 %991  ;;  %vm852_vm9 = vcmp.eq.s32.totalorder %v2241_v37, %v826_v5  ;;  %v901_v5 = vmul.f32 %v2469_v35, %v1842_v1 }
 0x191   : > { %vm1026_vm8 = vcmp.eq.s32.totalorder %v2241_v37, %v992_v3  ;;  %v1843_v60 = vsel %vm852_vm9, 1.0, %v2062_v40  ;;  %v1859_v3 = vsel %vm1030_vm12, 1.0, %v2062_v40 }
 0x192   : > { %918 = vadd.xlane.f32.xlu2 %v917_v8  ;;  %v1855_v33 = vsel %vm1026_vm8, 1.0, %v2062_v40  ;;  %v902_v34 = vmul.f32 %v2469_v35, %v1843_v60  ;;  %v935_v4 = vsel %vm729_vm3, %v901_v5, 0.0  ;;  %v1080_v13 = vmul.f32 %v2479_v25, %v1859_v3 }
 0x193   : > { %v1076_v58 = vmul.f32 %v2479_v25, %v1855_v33 }
 0x194   : > { %v838_v6 = vpop.permute.xlu0 %837  ;;  %v938_v15 = vsel %vm729_vm3, %v902_v34, 0.0  ;;  %v1116_v14 = vsel %vm729_vm3, %v1080_v13, 0.0 }
 0x195   : > { %933 = vadd.xlane.f32.xlu0 %v932_v9  ;;  %v1104_v62 = vsel %vm729_vm3, %v1076_v58, 0.0  ;;  %vm856_vm13 = vcmp.eq.s32.totalorder %v2241_v37, %v838_v6 }
 0x196   : > { %1099 = vadd.xlane.f32.xlu1 %v1098_v20  ;;  %v1847_v7 = vsel %vm856_vm13, 1.0, %v2062_v40 }
 0x197   : > { %v829_v26 = vpop.permute.xlu2 %828  ;;  %v906_v9 = vmul.f32 %v2469_v35, %v1847_v7 }
 0x198   : > { %v998_v27 = vpop.permute.xlu1 %997  ;;  %vm853_vm7 = vcmp.eq.s32.totalorder %v2241_v37, %v829_v26 }
 0x199   : > { %vm1028_vm5 = vcmp.eq.s32.totalorder %v2241_v37, %v998_v27  ;;  %v1844_v48 = vsel %vm853_vm7, 1.0, %v2062_v40  ;;  %v950_v17 = vsel %vm729_vm3, %v906_v9, 0.0 }
 0x19a   : > { %v1857_v30 = vsel %vm1028_vm5, 1.0, %v2062_v40  ;;  %1096 = vadd.xlane.f32.xlu2 %v1095_v28  ;;  %v903_v56 = vmul.f32 %v2469_v35, %v1844_v48 }
 0x19b   : > { %v1078_v32 = vmul.f32 %v2479_v25, %v1857_v30 }
 0x19c   : > { %v941_v57 = vsel %vm729_vm3, %v903_v56, 0.0 }
 0x19d   : > { %v1110_v42 = vsel %vm729_vm3, %v1078_v32, 0.0 }
 0x19e   : > { %930 = vadd.xlane.f32.xlu1 %v929_v51  ;;  %1111 = vadd.xlane.f32.xlu0 %v1110_v42 }
 0x19f   : > { %v1007_v49 = vpop.permute.xlu2 %1006 }
 0x1a0   : > { %v1001_v50 = vpop.permute.xlu1 %1000  ;;  %vm1031_vm10 = vcmp.eq.s32.totalorder %v2241_v37, %v1007_v49 }
 0x1a1   : > { %v1860_v61 = vsel %vm1031_vm10, 1.0, %v2062_v40  ;;  %vm1029_vm14 = vcmp.eq.s32.totalorder %v2241_v37, %v1001_v50 }
 0x1a2   : > { %927 = vadd.xlane.f32.xlu2 %v926_v24  ;;  %v1081_v0 = vmul.f32 %v2479_v25, %v1860_v61  ;;  %v1858_v20 = vsel %vm1029_vm14, 1.0, %v2062_v40 }
 0x1a3   : > { %v1079_v26 = vmul.f32 %v2479_v25, %v1858_v20 }
 0x1a4   : > { %v1119_v2 = vsel %vm729_vm3, %v1081_v0, 0.0 }
 0x1a5   : > { %v1113_v23 = vsel %vm729_vm3, %v1079_v26, 0.0 }
 0x1a6   : > { %1108 = vadd.xlane.f32.xlu1 %v1107_v46  ;;  %942 = vadd.xlane.f32.xlu0 %v941_v57 }
 0x1a7   : > { %v1010_v8 = vpop.permute.xlu2 %1009 }
 0x1a8   : > { %vm1032_vm2 = vcmp.eq.s32.totalorder %v2241_v37, %v1010_v8 }
 0x1a9   : > { %v832_v63 = vpop.permute.xlu1 %831  ;;  %v1861_v49 = vsel %vm1032_vm2, 1.0, %v2062_v40 }
 0x1aa   : > { %1105 = vadd.xlane.f32.xlu2 %v1104_v62  ;;  %vm854_vm0 = vcmp.eq.s32.totalorder %v2241_v37, %v832_v63  ;;  %v1082_v33 = vmul.f32 %v2479_v25, %v1861_v49 }
 0x1ab   : > { %v1845_v30 = vsel %vm854_vm0, 1.0, %v2062_v40 }
 0x1ac   : > { %v904_v16 = vmul.f32 %v2469_v35, %v1845_v30  ;;  %v1122_v58 = vsel %vm729_vm3, %v1082_v33, 0.0 }
 0x1ae   : > { %939 = vadd.xlane.f32.xlu1 %v938_v15  ;;  %1120 = vadd.xlane.f32.xlu0 %v1119_v2  ;;  %v944_v48 = vsel %vm729_vm3, %v904_v16, 0.0 }
 0x1af   : > { %v841_v27 = vpop.permute.xlu2 %840 }
 0x1b0   : > { %vm857_vm6 = vcmp.eq.s32.totalorder %v2241_v37, %v841_v27 }
 0x1b1   : > { %v835_v11 = vpop.permute.xlu1 %834  ;;  %v1848_v61 = vsel %vm857_vm6, 1.0, %v2062_v40 }
 0x1b2   : > { %936 = vadd.xlane.f32.xlu2 %v935_v4  ;;  %vm855_vm15 = vcmp.eq.s32.totalorder %v2241_v37, %v835_v11  ;;  %v907_v62 = vmul.f32 %v2469_v35, %v1848_v61 }
 0x1b3   : > { %v1846_v28 = vsel %vm855_vm15, 1.0, %v2062_v40 }
 0x1b4   : > { %v905_v29 = vmul.f32 %v2469_v35, %v1846_v28  ;;  %v953_v63 = vsel %vm729_vm3, %v907_v62, 0.0 }
 0x1b6   : > { %1117 = vadd.xlane.f32.xlu1 %v1116_v14  ;;  %951 = vadd.xlane.f32.xlu0 %v950_v17  ;;  %v947_v42 = vsel %vm729_vm3, %v905_v29, 0.0 }
 0x1b7   : > { %v1019_v47 = vpop.permute.xlu2 %1018 }
 0x1b8   : > { %vm1035_vm4 = vcmp.eq.s32.totalorder %v2241_v37, %v1019_v47 }
 0x1b9   : > { %v1864_v46 = vsel %vm1035_vm4, 1.0, %v2062_v40 }
 0x1ba   : > { %1114 = vadd.xlane.f32.xlu2 %v1113_v23  ;;  %v1013_v32 = vpop.permute.xlu1 %1012  ;;  %v1085_v60 = vmul.f32 %v2479_v25, %v1864_v46 }
 0x1bb   : > { %vm1033_vm1 = vcmp.eq.s32.totalorder %v2241_v37, %v1013_v32 }
 0x1bc   : > { %v1862_v51 = vsel %vm1033_vm1, 1.0, %v2062_v40  ;;  %v1131_v6 = vsel %vm729_vm3, %v1085_v60, 0.0 }
 0x1bd   : > { %v1083_v43 = vmul.f32 %v2479_v25, %v1862_v51 }
 0x1be   : > { %948 = vadd.xlane.f32.xlu1 %v947_v42 }
 0x1bf   : > { %v1125_v24 = vsel %vm729_vm3, %v1083_v43, 0.0 }
 0x1c2   : > { %945 = vadd.xlane.f32.xlu2 %v944_v48  ;;  %v1016_v50 = vpop.permute.xlu1 %1015 }
 0x1c3   : > { %vm1034_vm5 = vcmp.eq.s32.totalorder %v2241_v37, %v1016_v50 }
 0x1c4   : > { %v1863_v55 = vsel %vm1034_vm5, 1.0, %v2062_v40 }
 0x1c5   : > { %v1084_v56 = vmul.f32 %v2479_v25, %v1863_v55 }
 0x1c6   : > { %1126 = vadd.xlane.f32.xlu1 %v1125_v24 }
 0x1c7   : > { %v1128_v57 = vsel %vm729_vm3, %v1084_v56, 0.0  ;;  %v1454_v56 = vld [vmem:[%s2617_s11] sm:$0xff] }
 0x1c8   : > { %1129 = vadd.xlane.f32.xlu0 %v1128_v57  ;;  %v1598_v62 = vsub.f32 1.0, %v1454_v56 }
 0x1ca   : > { %1123 = vadd.xlane.f32.xlu2 %v1122_v58 }
 0x1ce   : > { %1132 = vadd.xlane.f32.xlu1 %v1131_v6 }
 0x1d2   : > { %954 = vadd.xlane.f32.xlu2 %v953_v63 }
 0x1d8   : > { %v910_v34 = vpop.xlane.xlu0 %909 }
 0x1d9   : > { %v956_v0 = vadd.f32 %v910_v34, %v2401_v10 }
 0x1e4   : > { %v1088_v1 = vpop.xlane.xlu0 %1087 }
 0x1e5   : > { %v1134_v15 = vadd.f32 %v1088_v1, %v956_v0 }
 0x1e7   : > { %v1865_v2 = vmul.f32 -1.442695, %v1134_v15 }
 0x1e9   : > { %1925 = vpow2.f32 %v1865_v2 }
 0x1ed   : > { %v913_v40 = vpop.xlane.xlu1 %912 }
 0x1ee   : > { %v957_v8 = vadd.f32 %v913_v40, %v2422_v41 }
 0x1ef   : > { %v1926_v5 = vpop.eup %1925 }
 0x1f0   : > { %v1198_v25 = vadd.f32 1.0, %v1926_v5  ;;  %v1094_v3 = vpop.xlane.xlu0 %1093 }
 0x1f2   : > { %1927 = vrcp.f32 %v1198_v25  ;;  %v1225_v20 = vand.u32 2147483648, %v1198_v25  ;;  %v1223_v17 = vand.u32 2147483647, %v1198_v25  ;;  %vm1219_vm7 = vweird.f32 %v1198_v25 }
 0x1f4   : > { %v1226_v41 = vor.u32 1.1754944e-38, %v1225_v20  ;;  %vm1224_vm9 = vcmp.eq.f32.partialorder %v1223_v17, 8.507059e+37  ;;  %v2638_v17 = vld [vmem:[%s2617_s11 + $0x28] sm:$0xff] }
 0x1f8   : > { %v1928_v7 = vpop.eup %1927  ;;  %v925_v35 = vpop.xlane.xlu0 %924 }
 0x1f9   : > { %v1215_v4 = vmul.f32 %v1928_v7, %v1198_v25  ;;  %v1091_v11 = vpop.xlane.xlu1 %1090  ;;  %vm1220_vm3 = vweird.f32 %v1928_v7  ;;  %v961_v23 = vadd.f32 %v925_v35, %v2418_v31 }
 0x1fa   : > { %v1135_v13 = vadd.f32 %v1091_v11, %v957_v8  ;;  %vm1221_vm8 = vmor %vm1219_vm7, %vm1220_vm3  ;;  %v2628_v8 = vld [vmem:[%s2617_s11 + $0x8] sm:$0xff] }
 0x1fb   : > { %v1216_v9 = vsub.f32 1.0, %v1215_v4 }
 0x1fc   : > { %v1866_v14 = vmul.f32 -1.442695, %v1135_v13  ;;  %v2631_v13 = vld [vmem:[%s2617_s11 + $0x10] sm:$0xff] }
 0x1fd   : > { %v1217_v10 = vmul.f32 %v1928_v7, %v1216_v9  ;;  %v916_v26 = vpop.xlane.xlu2 %915 }
 0x1fe   : > { %1929 = vpow2.f32 %v1866_v14  ;;  %v958_v27 = vadd.f32 %v916_v26, %v2407_v21 }
 0x1ff   : > { %v1218_v28 = vadd.f32 %v1928_v7, %v1217_v10 }
 0x200   : > { %v1136_v29 = vadd.f32 %v1094_v3, %v958_v27  ;;  %v1103_v30 = vpop.xlane.xlu0 %1102 }
 0x201   : > { %v1222_v32 = vsel %vm1221_vm8, %v1928_v7, %v1218_v28  ;;  %v1139_v51 = vadd.f32 %v1103_v30, %v961_v23  ;;  %v922_v42 = vpop.xlane.xlu1 %921  ;;  %v1599_v28 = vsub.f32 1.0, %v2628_v8  ;;  %v1600_v30 = vsub.f32 1.0, %v2631_v13 }
 0x202   : > { %v1227_v16 = vsel %vm1224_vm9, %v1226_v41, %v1222_v32  ;;  %v1867_v43 = vmul.f32 -1.442695, %v1136_v29  ;;  %v960_v31 = vadd.f32 %v922_v42, %v2399_v12  ;;  %v1603_v42 = vsub.f32 1.0, %v2638_v17 }
 0x203   : > { %1931 = vlog2.f32 %v1227_v16  ;;  %v1518_v47 = vsub.f32 1.0, %v1227_v16  ;;  %v1870_v48 = vmul.f32 -1.442695, %v1139_v51 }
 0x204   : > { %v1930_v49 = vpop.eup %1929  ;;  %1933 = vpow2.f32 %v1867_v43 }
 0x205   : > { %1935 = vlog2.f32 %v1518_v47  ;;  %v1199_v21 = vadd.f32 1.0, %v1930_v49  ;;  %v919_v50 = vpop.xlane.xlu2 %918 }
 0x206   : > { %1937 = vpow2.f32 %v1870_v48  ;;  %v959_v25 = vadd.f32 %v919_v50, %v2429_v44 }
 0x207   : > { %1939 = vrcp.f32 %v1199_v21  ;;  %v1238_v3 = vand.u32 2147483647, %v1199_v21  ;;  %v1240_v4 = vand.u32 2147483648, %v1199_v21  ;;  %vm1234_vm12 = vweird.f32 %v1199_v21 }
 0x208   : > { %v934_v24 = vpop.xlane.xlu0 %933 }
 0x209   : > { %v1932_v55 = vpop.eup %1931  ;;  %v1100_v33 = vpop.xlane.xlu1 %1099  ;;  %v964_v9 = vadd.f32 %v934_v24, %v2409_v22  ;;  %vm2641_vm13 = vcmp.eq.f32.partialorder %v1238_v3, 8.507059e+37  ;;  %v1241_v29 = vor.u32 1.1754944e-38, %v1240_v4 }
 0x20a   : > { %v1934_v46 = vpop.eup %1933  ;;  %v1471_v57 = vmul.f32 0.6931472, %v1932_v55  ;;  %v1138_v58 = vadd.f32 %v1100_v33, %v960_v31 }
 0x20b   : > { %v1936_v60 = vpop.eup %1935  ;;  %v2621_v61 = vadd.f32 1.0, %v1934_v46  ;;  %v2657_v46 = vld [vmem:[%s2617_s11 + $0x20] sm:$0xff] }
 0x20c   : > { %v1938_v6 = vpop.eup %1937  ;;  %v1502_v63 = vmax.f32 %v1471_v57, -100.0  ;;  %v1535_v34 = vmul.f32 0.6931472, %v1936_v60  ;;  %v1869_v0 = vmul.f32 -1.442695, %v1138_v58 }
 0x20d   : > { %v1940_v1 = vpop.eup %1939  ;;  %1941 = vrcp.f32 %v2621_v61  ;;  %v1097_v12 = vpop.xlane.xlu2 %1096  ;;  %v2625_v40 = vadd.f32 1.0, %v1938_v6  ;;  %vm1249_vm15 = vweird.f32 %v2621_v61  ;;  %v1253_v49 = vand.u32 2147483647, %v2621_v61 }
 0x20e   : > { %v1566_v15 = vmax.f32 %v1535_v34, -100.0  ;;  %v1582_v2 = vmul.f32 %v1502_v63, %v1454_v56  ;;  %v1230_v5 = vmul.f32 %v1940_v1, %v1199_v21  ;;  %1943 = vpow2.f32 %v1869_v0 }
 0x20f   : > { %v1137_v11 = vadd.f32 %v1097_v12, %v959_v25  ;;  %1945 = vrcp.f32 %v2625_v40  ;;  %vm1235_vm10 = vweird.f32 %v1940_v1  ;;  %v1255_v24 = vand.u32 2147483648, %v2621_v61 }
 0x210   : > { %v1614_v7 = vmul.f32 %v1598_v62, %v1566_v15  ;;  %v1231_v35 = vsub.f32 1.0, %v1230_v5  ;;  %vm1236_vm14 = vmor %vm1234_vm12, %vm1235_vm10  ;;  %v1298_v57 = vand.u32 2147483647, %v2625_v40  ;;  %v1300_v58 = vand.u32 2147483648, %v2625_v40 }
 0x211   : > { %v931_v20 = vpop.xlane.xlu1 %930  ;;  %v1112_v14 = vpop.xlane.xlu0 %1111  ;;  %v1868_v26 = vmul.f32 -1.442695, %v1137_v11  ;;  %vm1254_vm2 = vcmp.eq.f32.partialorder %v1253_v49, 8.507059e+37  ;;  %v1602_v12 = vsub.f32 1.0, %v2657_v46  ;;  %vm1294_vm5 = vweird.f32 %v2625_v40 }
 0x212   : > { %v2635_v44 = vadd.f32 %v1614_v7, %v1582_v2  ;;  %v1232_v10 = vmul.f32 %v1940_v1, %v1231_v35  ;;  %v1142_v41 = vadd.f32 %v1112_v14, %v964_v9  ;;  %v963_v60 = vadd.f32 %v931_v20, %v2438_v52 }
 0x213   : > { %v1942_v27 = vpop.eup %1941  ;;  %1947 = vpow2.f32 %v1868_v26  ;;  %vm2671_vm6 = vcmp.eq.f32.partialorder %v1298_v57, 8.507059e+37 }
 0x214   : > { %v1233_v22 = vadd.f32 %v1940_v1, %v1232_v10  ;;  %v1245_v32 = vmul.f32 %v1942_v27, %v2621_v61  ;;  %v1944_v51 = vpop.eup %1943  ;;  %v1873_v16 = vmul.f32 -1.442695, %v1142_v41  ;;  %vm1250_vm0 = vweird.f32 %v1942_v27 }
 0x215   : > { %v928_v43 = vpop.xlane.xlu2 %927  ;;  %v2650_v21 = vadd.f32 1.0, %v1944_v51  ;;  %v1946_v50 = vpop.eup %1945  ;;  %v1646_v62 = vsub.f32 0.0, %v2635_v44  ;;  %vm1251_vm1 = vmor %vm1249_vm15, %vm1250_vm0  ;;  %v1301_v61 = vor.u32 1.1754944e-38, %v1300_v58 }
 0x216   : > { %v1237_v47 = vsel %vm1236_vm14, %v1940_v1, %v1233_v22  ;;  %v1246_v48 = vsub.f32 1.0, %v1245_v32  ;;  %1949 = vpow2.f32 %v1873_v16  ;;  %v1290_v33 = vmul.f32 %v1946_v50, %v2625_v40 }
 0x217   : > { %v1242_v31 = vsel %vm2641_vm13, %v1241_v29, %v1237_v47  ;;  %v1256_v1 = vor.u32 1.1754944e-38, %v1255_v24  ;;  %vm1295_vm4 = vweird.f32 %v1946_v50  ;;  %v2676_v11 = vsel %vm1662_vm11, %v1646_v62, 0.0 }
 0x218   : > { %1951 = vlog2.f32 %v1242_v31  ;;  %v1519_v55 = vsub.f32 1.0, %v1242_v31  ;;  %v1247_v56 = vmul.f32 %v1942_v27, %v1246_v48  ;;  %v1291_v34 = vsub.f32 1.0, %v1290_v33  ;;  %vm1296_vm3 = vmor %vm1294_vm5, %vm1295_vm4 }
 0x219   : > { %1953 = vrcp.f32 %v2650_v21  ;;  %v1109_v6 = vpop.xlane.xlu1 %1108  ;;  %v1948_v0 = vpop.eup %1947  ;;  %v962_v40 = vadd.f32 %v928_v43, %v2440_v54  ;;  %vm1279_vm7 = vweird.f32 %v2650_v21  ;;  %v1283_v32 = vand.u32 2147483647, %v2650_v21 }
 0x21a   : > { %1955 = vlog2.f32 %v1519_v55  ;;  %v1248_v63 = vadd.f32 %v1942_v27, %v1247_v56  ;;  %v1141_v15 = vadd.f32 %v1109_v6, %v963_v60  ;;  %v1292_v5 = vmul.f32 %v1946_v50, %v1291_v34  ;;  %v943_v55 = vpop.xlane.xlu0 %942 }
 0x21b   : > { %v2668_v52 = vadd.f32 1.0, %v1948_v0  ;;  %v1285_v43 = vand.u32 2147483648, %v2650_v21  ;;  %vm2695_vm9 = vcmp.eq.f32.partialorder %v1283_v32, 8.507059e+37 }
 0x21c   : > { %v1252_v2 = vsel %vm1251_vm1, %v1942_v27, %v1248_v63  ;;  %v1950_v25 = vpop.eup %1949  ;;  %v1293_v20 = vadd.f32 %v1946_v50, %v1292_v5  ;;  %v1872_v10 = vmul.f32 -1.442695, %v1141_v15 }
 0x21d   : > { %v1257_v3 = vsel %vm1254_vm2, %v1256_v1, %v1252_v2  ;;  %v1106_v35 = vpop.xlane.xlu2 %1105  ;;  %v2690_v49 = vadd.f32 1.0, %v1950_v25  ;;  %v1270_v24 = vand.u32 2147483648, %v2668_v52  ;;  %v1286_v63 = vor.u32 1.1754944e-38, %v1285_v43 }
 0x21e   : > { %v1952_v4 = vpop.eup %1951  ;;  %1957 = vlog2.f32 %v1257_v3  ;;  %v1520_v9 = vsub.f32 1.0, %v1257_v3  ;;  %v1297_v27 = vsel %vm1296_vm3, %v1946_v50, %v1293_v20  ;;  %vm1264_vm10 = vweird.f32 %v2668_v52 }
 0x21f   : > { %v1954_v14 = vpop.eup %1953  ;;  %v1473_v44 = vmul.f32 0.6931472, %v1952_v4  ;;  %1959 = vrcp.f32 %v2668_v52  ;;  %v1302_v29 = vsel %vm2671_vm6, %v1301_v61, %v1297_v27  ;;  %v1271_v25 = vor.u32 1.1754944e-38, %v1270_v24 }
 0x220   : > { %v1956_v26 = vpop.eup %1955  ;;  %1961 = vlog2.f32 %v1520_v9  ;;  %v1275_v23 = vmul.f32 %v1954_v14, %v2650_v21  ;;  %v1523_v16 = vsub.f32 1.0, %v1302_v29  ;;  %vm1280_vm8 = vweird.f32 %v1954_v14 }
 0x221   : > { %v1503_v41 = vmax.f32 %v1473_v44, -100.0  ;;  %v1537_v22 = vmul.f32 0.6931472, %v1956_v26  ;;  %v2686_v51 = vpop.xlane.xlu1 %939  ;;  %1963 = vlog2.f32 %v1302_v29  ;;  %vm1281_vm12 = vmor %vm1279_vm7, %vm1280_vm8  ;;  %v1140_v3 = vadd.f32 %v1106_v35, %v962_v40 }
 0x222   : > { %v1276_v54 = vsub.f32 1.0, %v1275_v23  ;;  %1965 = vpow2.f32 %v1872_v10  ;;  %v1345_v58 = vand.u32 2147483648, %v2690_v49  ;;  %vm1339_vm1 = vweird.f32 %v2690_v49 }
 0x223   : > { %v1567_v47 = vmax.f32 %v1537_v22, -100.0  ;;  %v1583_v48 = vmul.f32 %v1503_v41, %v2628_v8  ;;  %1967 = vlog2.f32 %v1523_v16 }
 0x224   : > { %v1958_v50 = vpop.eup %1957  ;;  %v1277_v31 = vmul.f32 %v1954_v14, %v1276_v54  ;;  %1969 = vrcp.f32 %v2690_v49 }
 0x225   : > { %v1960_v56 = vpop.eup %1959  ;;  %v1615_v33 = vmul.f32 %v1599_v28, %v1567_v47  ;;  %v1475_v57 = vmul.f32 0.6931472, %v1958_v50  ;;  %v2700_v60 = vpop.xlane.xlu2 %936  ;;  %v1268_v28 = vand.u32 2147483647, %v2668_v52 }
 0x226   : > { %v1962_v6 = vpop.eup %1961  ;;  %v1278_v62 = vadd.f32 %v1954_v14, %v1277_v31  ;;  %v1260_v34 = vmul.f32 %v1960_v56, %v2668_v52  ;;  %vm1265_vm13 = vweird.f32 %v1960_v56  ;;  %v1343_v52 = vand.u32 2147483647, %v2690_v49 }
 0x227   : > { %v1631_v0 = vadd.f32 %v1615_v33, %v1583_v48  ;;  %v1504_v1 = vmax.f32 %v1475_v57, -100.0  ;;  %v1539_v8 = vmul.f32 0.6931472, %v1962_v6  ;;  %v1964_v15 = vpop.eup %1963  ;;  %vm1266_vm14 = vmor %vm1264_vm10, %vm1265_vm13  ;;  %vm1269_vm15 = vcmp.eq.f32.partialorder %v1268_v28, 8.507059e+37  ;;  %v1121_v48 = vpop.xlane.xlu0 %1120 }
 0x228   : > { %v1282_v2 = vsel %vm1281_vm12, %v1954_v14, %v1278_v62  ;;  %v1261_v5 = vsub.f32 1.0, %v1260_v34  ;;  %v1966_v7 = vpop.eup %1965  ;;  %v1481_v20 = vmul.f32 0.6931472, %v1964_v15  ;;  %v1871_v33 = vmul.f32 -1.442695, %v1140_v3 }
 0x229   : > { %v1647_v61 = vsub.f32 0.0, %v1631_v0  ;;  %v1568_v4 = vmax.f32 %v1539_v8, -100.0  ;;  %v1584_v9 = vmul.f32 %v1504_v1, %v2631_v13  ;;  %v1118_v44 = vpop.xlane.xlu1 %1117  ;;  %v1968_v10 = vpop.eup %1967  ;;  %v1287_v26 = vsel %vm2695_vm9, %v1286_v63, %v1282_v2 }
 0x22a   : > { %v1262_v21 = vmul.f32 %v1960_v56, %v1261_v5  ;;  %v2711_v27 = vadd.f32 1.0, %v1966_v7  ;;  %v1970_v23 = vpop.eup %1969  ;;  %v1507_v40 = vmax.f32 %v1481_v20, -100.0  ;;  %v1545_v41 = vmul.f32 0.6931472, %v1968_v10  ;;  %v1457_v5 = vld [vmem:[%s2617_s11 + $0x18] sm:$0xff] }
 0x22b   : > { %v1664_v14 = vsel %vm1662_vm11, %v1647_v61, 0.0  ;;  %v1616_v35 = vmul.f32 %v1600_v30, %v1568_v4  ;;  %1971 = vlog2.f32 %v1287_v26  ;;  %v1522_v29 = vsub.f32 1.0, %v1287_v26 }
 0x22c   : > { %v2717_v22 = vadd.f32 %v1664_v14, %v2676_v11  ;;  %v1263_v32 = vadd.f32 %v1960_v56, %v1262_v21  ;;  %v1571_v54 = vmax.f32 %v1545_v41, -100.0  ;;  %v2722_v43 = vmul.f32 %v1507_v40, %v2638_v17 }
 0x22d   : > { %v2719_v16 = vadd.f32 %v1616_v35, %v1584_v9  ;;  %v1335_v13 = vmul.f32 %v1970_v23, %v2690_v49  ;;  %v1115_v30 = vpop.xlane.xlu2 %1114  ;;  %1973 = vlog2.f32 %v1522_v29  ;;  %v967_v11 = vadd.f32 %v943_v55, %v2452_v38 }
 0x22e   : > { %v1267_v47 = vsel %vm1266_vm14, %v1960_v56, %v1263_v32  ;;  %v2730_v50 = vmul.f32 %v1603_v42, %v1571_v54  ;;  %vm1340_vm0 = vweird.f32 %v1970_v23  ;;  %v966_v17 = vadd.f32 %v2686_v51, %v2420_v39 }
 0x22f   : > { %v1272_v31 = vsel %vm1269_vm15, %v1271_v25, %v1267_v47  ;;  %v1336_v24 = vsub.f32 1.0, %v1335_v13  ;;  %v1145_v56 = vadd.f32 %v1121_v48, %v967_v11  ;;  %v965_v42 = vadd.f32 %v2700_v60, %v2431_v45  ;;  %vm1341_vm2 = vmor %vm1339_vm1, %vm1340_vm0  ;;  %v952_v29 = vpop.xlane.xlu0 %951 }
 0x230   : > { %1975 = vlog2.f32 %v1272_v31  ;;  %v1521_v57 = vsub.f32 1.0, %v1272_v31  ;;  %vm1344_vm4 = vcmp.eq.f32.partialorder %v1343_v52, 8.507059e+37  ;;  %v1346_v1 = vor.u32 1.1754944e-38, %v1345_v58 }
 0x231   : > { %v1337_v6 = vmul.f32 %v1970_v23, %v1336_v24  ;;  %1977 = vrcp.f32 %v2711_v27  ;;  %v949_v38 = vpop.xlane.xlu1 %948  ;;  %v1972_v55 = vpop.eup %1971  ;;  %v1876_v34 = vmul.f32 -1.442695, %v1145_v56  ;;  %v1144_v8 = vadd.f32 %v1118_v44, %v966_v17  ;;  %v2754_v24 = vld [vmem:[%s2617_s11 + $0x30] sm:$0xff] }
 0x232   : > { %1979 = vlog2.f32 %v1521_v57  ;;  %v1479_v62 = vmul.f32 0.6931472, %v1972_v55  ;;  %v1143_v28 = vadd.f32 %v1115_v30, %v965_v42  ;;  %v1601_v20 = vsub.f32 1.0, %v1457_v5 }
 0x233   : > { %v1338_v63 = vadd.f32 %v1970_v23, %v1337_v6  ;;  %1981 = vpow2.f32 %v1871_v33  ;;  %v1974_v0 = vpop.eup %1973  ;;  %v1875_v51 = vmul.f32 -1.442695, %v1144_v8  ;;  %v1330_v35 = vand.u32 2147483648, %v2711_v27 }
 0x234   : > { %v1506_v15 = vmax.f32 %v1479_v62, -100.0  ;;  %v1543_v2 = vmul.f32 0.6931472, %v1974_v0  ;;  %1983 = vpow2.f32 %v1876_v34  ;;  %v1874_v3 = vmul.f32 -1.442695, %v1143_v28 }
 0x235   : > { %v1342_v49 = vsel %vm1341_vm2, %v1970_v23, %v1338_v63  ;;  %v946_v45 = vpop.xlane.xlu2 %945  ;;  %v969_v32 = vadd.f32 %v949_v38, %v2447_v53  ;;  %vm1324_vm6 = vweird.f32 %v2711_v27  ;;  %v1331_v58 = vor.u32 1.1754944e-38, %v1330_v35 }
 0x236   : > { %v1976_v25 = vpop.eup %1975  ;;  %v1347_v39 = vsel %vm1344_vm4, %v1346_v1, %v1342_v49  ;;  %v1570_v7 = vmax.f32 %v1543_v2, -100.0  ;;  %v1586_v61 = vmul.f32 %v1506_v15, %v2657_v46  ;;  %v1604_v62 = vsub.f32 1.0, %v2754_v24 }
 0x237   : > { %v1978_v60 = vpop.eup %1977  ;;  %v1477_v4 = vmul.f32 0.6931472, %v1976_v25  ;;  %1985 = vlog2.f32 %v1347_v39  ;;  %v1526_v44 = vsub.f32 1.0, %v1347_v39  ;;  %v970_v1 = vadd.f32 %v952_v29, %v2456_v18 }
 0x238   : > { %v1980_v9 = vpop.eup %1979  ;;  %v1320_v10 = vmul.f32 %v1978_v60, %v2711_v27  ;;  %1987 = vpow2.f32 %v1875_v51  ;;  %v1618_v21 = vmul.f32 %v1602_v12, %v1570_v7  ;;  %vm1325_vm5 = vweird.f32 %v1978_v60 }
 0x239   : > { %v1982_v26 = vpop.eup %1981  ;;  %v1505_v23 = vmax.f32 %v1477_v4, -100.0  ;;  %v1541_v14 = vmul.f32 0.6931472, %v1980_v9  ;;  %1989 = vpow2.f32 %v1874_v3  ;;  %v1127_v54 = vpop.xlane.xlu1 %1126  ;;  %v1328_v12 = vand.u32 2147483647, %v2711_v27  ;;  %vm1326_vm3 = vmor %vm1324_vm6, %vm1325_vm5 }
 0x23a   : > { %v1321_v40 = vsub.f32 1.0, %v1320_v10  ;;  %v2746_v41 = vadd.f32 1.0, %v1982_v26  ;;  %v1984_v13 = vpop.eup %1983  ;;  %v2749_v30 = vadd.f32 %v1618_v21, %v1586_v61  ;;  %1991 = vlog2.f32 %v1526_v44 }
 0x23b   : > { %v1569_v47 = vmax.f32 %v1541_v14, -100.0  ;;  %v1585_v11 = vmul.f32 %v1505_v23, %v1457_v5  ;;  %v2756_v33 = vadd.f32 1.0, %v1984_v13  ;;  %v1147_v53 = vadd.f32 %v1127_v54, %v969_v32  ;;  %v1130_v5 = vpop.xlane.xlu0 %1129 }
 0x23c   : > { %v1322_v46 = vmul.f32 %v1978_v60, %v1321_v40  ;;  %1993 = vrcp.f32 %v2746_v41  ;;  %v1313_v56 = vand.u32 2147483647, %v2746_v41  ;;  %v1315_v38 = vand.u32 2147483648, %v2746_v41 }
 0x23d   : > { %v1986_v48 = vpop.eup %1985  ;;  %v1617_v31 = vmul.f32 %v1601_v20, %v1569_v47  ;;  %1995 = vrcp.f32 %v2756_v33  ;;  %vm1329_vm7 = vcmp.eq.f32.partialorder %v1328_v12, 8.507059e+37  ;;  %v1124_v63 = vpop.xlane.xlu2 %1123  ;;  %v1878_v8 = vmul.f32 -1.442695, %v1147_v53 }
 0x23e   : > { %v1988_v57 = vpop.eup %1987  ;;  %v1323_v52 = vadd.f32 %v1978_v60, %v1322_v46  ;;  %v2764_v17 = vmul.f32 0.6931472, %v1986_v48  ;;  %vm1309_vm8 = vweird.f32 %v2746_v41  ;;  %v968_v2 = vadd.f32 %v946_v45, %v2450_v59 }
 0x23f   : > { %v2759_v6 = vadd.f32 %v1617_v31, %v1585_v11  ;;  %v1990_v55 = vpop.eup %1989  ;;  %v2767_v0 = vadd.f32 1.0, %v1988_v57  ;;  %vm2773_vm9 = vcmp.eq.f32.partialorder %v1313_v56, 8.507059e+37  ;;  %v1316_v39 = vor.u32 1.1754944e-38, %v1315_v38 }
 0x240   : > { %v1327_v42 = vsel %vm1326_vm3, %v1978_v60, %v1323_v52  ;;  %v1992_v34 = vpop.eup %1991  ;;  %v1388_v51 = vand.u32 2147483647, %v2756_v33  ;;  %v1510_v18 = vmax.f32 %v2764_v17, -100.0  ;;  %vm1384_vm10 = vweird.f32 %v2756_v33  ;;  %v1464_v17 = vld [vmem:[%s2617_s11 + $0x50] sm:$0xff] }
 0x241   : > { %v1332_v27 = vsel %vm1329_vm7, %v1331_v58, %v1327_v42  ;;  %v2780_v3 = vmul.f32 0.6931472, %v1992_v34  ;;  %v1390_v59 = vand.u32 2147483648, %v2756_v33  ;;  %v2784_v7 = vadd.f32 1.0, %v1990_v55 }
 0x242   : > { %v1994_v28 = vpop.eup %1993  ;;  %1997 = vlog2.f32 %v1332_v27  ;;  %v1525_v15 = vsub.f32 1.0, %v1332_v27  ;;  %v1148_v61 = vadd.f32 %v1130_v5, %v970_v1  ;;  %v1373_v9 = vand.u32 2147483647, %v2767_v0 }
 0x243   : > { %v1305_v49 = vmul.f32 %v1994_v28, %v2746_v41  ;;  %1999 = vrcp.f32 %v2767_v0  ;;  %v1996_v45 = vpop.eup %1995  ;;  %v1375_v20 = vand.u32 2147483648, %v2767_v0  ;;  %vm1310_vm12 = vweird.f32 %v1994_v28 }
 0x244   : > { %2001 = vpow2.f32 %v1878_v8  ;;  %v1380_v4 = vmul.f32 %v1996_v45, %v2756_v33  ;;  %vm2789_vm13 = vcmp.eq.f32.partialorder %v1388_v51, 8.507059e+37  ;;  %v1574_v21 = vmax.f32 %v2780_v3, -100.0  ;;  %vm1311_vm0 = vmor %vm1309_vm8, %vm1310_vm12 }
 0x245   : > { %v1306_v60 = vsub.f32 1.0, %v1305_v49  ;;  %2003 = vlog2.f32 %v1525_v15  ;;  %v1391_v14 = vor.u32 1.1754944e-38, %v1390_v59  ;;  %v1879_v35 = vmul.f32 -1.442695, %v1148_v61  ;;  %v955_v12 = vpop.xlane.xlu2 %954 }
 0x246   : > { %2005 = vrcp.f32 %v2784_v7  ;;  %v1381_v23 = vsub.f32 1.0, %v1380_v4  ;;  %vm1385_vm14 = vweird.f32 %v1996_v45  ;;  %vm1369_vm15 = vweird.f32 %v2767_v0 }
 0x247   : > { %v1307_v44 = vmul.f32 %v1994_v28, %v1306_v60  ;;  %v1146_v32 = vadd.f32 %v1124_v63, %v968_v2  ;;  %vm2799_vm1 = vcmp.eq.f32.partialorder %v1373_v9, 8.507059e+37  ;;  %v1376_v11 = vor.u32 1.1754944e-38, %v1375_v20  ;;  %vm1386_vm4 = vmor %vm1384_vm10, %vm1385_vm14  ;;  %v2869_v2 = vld [vmem:[%s2617_s11 + $0x38] sm:$0xff] }
 0x248   : > { %v1998_v26 = vpop.eup %1997  ;;  %v1382_v54 = vmul.f32 %v1996_v45, %v1381_v23  ;;  %v1358_v46 = vand.u32 2147483647, %v2784_v7  ;;  %v1360_v57 = vand.u32 2147483648, %v2784_v7  ;;  %2007 = vpow2.f32 %v1879_v35 }
 0x249   : > { %v2000_v40 = vpop.eup %1999  ;;  %v1308_v29 = vadd.f32 %v1994_v28, %v1307_v44  ;;  %v2804_v31 = vmul.f32 0.6931472, %v1998_v26  ;;  %vm1354_vm2 = vweird.f32 %v2784_v7  ;;  %v1877_v63 = vmul.f32 -1.442695, %v1146_v32 }
 0x24a   : > { %v1365_v13 = vmul.f32 %v2000_v40, %v2767_v0  ;;  %v2002_v48 = vpop.eup %2001  ;;  %v1383_v58 = vadd.f32 %v1996_v45, %v1382_v54  ;;  %v971_v34 = vadd.f32 %v955_v12, %v2462_v19  ;;  %vm1370_vm5 = vweird.f32 %v2000_v40  ;;  %v1133_v19 = vpop.xlane.xlu1 %1132 }
 0x24b   : > { %v1312_v53 = vsel %vm1311_vm0, %v1994_v28, %v1308_v29  ;;  %v2004_v41 = vpop.eup %2003  ;;  %v2810_v38 = vadd.f32 1.0, %v2002_v48  ;;  %vm2821_vm6 = vcmp.eq.f32.partialorder %v1358_v46, 8.507059e+37  ;;  %vm1371_vm3 = vmor %vm1369_vm15, %vm1370_vm5  ;;  %v1509_v4 = vmax.f32 %v2804_v31, -100.0  ;;  %v2900_v31 = vld [vmem:[%s2617_s11 + $0x48] sm:$0xff] }
 0x24c   : > { %v1317_v52 = vsel %vm2773_vm9, %v1316_v39, %v1312_v53  ;;  %v1366_v56 = vsub.f32 1.0, %v1365_v13  ;;  %v2006_v55 = vpop.eup %2005  ;;  %v1387_v27 = vsel %vm1386_vm4, %v1996_v45, %v1383_v58  ;;  %v2817_v28 = vmul.f32 0.6931472, %v2004_v41 }
 0x24d   : > { %2009 = vlog2.f32 %v1317_v52  ;;  %v1524_v42 = vsub.f32 1.0, %v1317_v52  ;;  %v1350_v8 = vmul.f32 %v2006_v55, %v2784_v7  ;;  %v1392_v15 = vsel %vm2789_vm13, %v1391_v14, %v1387_v27 }
 0x24e   : > { %v1367_v1 = vmul.f32 %v2000_v40, %v1366_v56  ;;  %v1529_v33 = vsub.f32 1.0, %v1392_v15  ;;  %v2008_v25 = vpop.eup %2007  ;;  %vm1355_vm7 = vweird.f32 %v2006_v55  ;;  %v1361_v39 = vor.u32 1.1754944e-38, %v1360_v57 }
 0x24f   : > { %2011 = vlog2.f32 %v1524_v42  ;;  %v1351_v49 = vsub.f32 1.0, %v1350_v8  ;;  %v1149_v51 = vadd.f32 %v1133_v19, %v971_v34  ;;  %v2828_v60 = vadd.f32 1.0, %v2008_v25  ;;  %vm1356_vm8 = vmor %vm1354_vm2, %vm1355_vm7 }
 0x250   : > { %v1368_v5 = vadd.f32 %v2000_v40, %v1367_v1  ;;  %2013 = vrcp.f32 %v2810_v38  ;;  %v1573_v9 = vmax.f32 %v2817_v28, -100.0  ;;  %v1418_v23 = vand.u32 2147483647, %v2810_v38 }
 0x251   : > { %2015 = vpow2.f32 %v1877_v63  ;;  %v1352_v45 = vmul.f32 %v2006_v55, %v1351_v49  ;;  %v1420_v14 = vand.u32 2147483648, %v2810_v38  ;;  %v1880_v35 = vmul.f32 -1.442695, %v1149_v51 }
 0x252   : > { %v1372_v59 = vsel %vm1371_vm3, %v2000_v40, %v1368_v5  ;;  %2017 = vlog2.f32 %v1392_v15  ;;  %v1433_v7 = vand.u32 2147483647, %v2828_v60  ;;  %v1435_v46 = vand.u32 2147483648, %v2828_v60 }
 0x253   : > { %v2010_v61 = vpop.eup %2009  ;;  %v1377_v20 = vsel %vm2799_vm1, %v1376_v11, %v1372_v59  ;;  %2019 = vlog2.f32 %v1529_v33  ;;  %v1353_v10 = vadd.f32 %v2006_v55, %v1352_v45  ;;  %vm1414_vm9 = vweird.f32 %v2810_v38  ;;  %v2872_v33 = vld [vmem:[%s2617_s11 + $0x40] sm:$0xff] }
 0x254   : > { %v1483_v0 = vmul.f32 0.6931472, %v2010_v61  ;;  %2021 = vlog2.f32 %v1377_v20  ;;  %v1528_v44 = vsub.f32 1.0, %v1377_v20  ;;  %vm2855_vm10 = vcmp.eq.f32.partialorder %v1418_v23, 8.507059e+37 }
 0x255   : > { %v2012_v26 = vpop.eup %2011  ;;  %2023 = vrcp.f32 %v2828_v60  ;;  %v1357_v54 = vsel %vm1356_vm8, %v2006_v55, %v1353_v10  ;;  %v1421_v1 = vor.u32 1.1754944e-38, %v1420_v14  ;;  %vm1429_vm13 = vweird.f32 %v2828_v60 }
 0x256   : > { %v2014_v40 = vpop.eup %2013  ;;  %v1508_v29 = vmax.f32 %v1483_v0, -100.0  ;;  %v1547_v32 = vmul.f32 0.6931472, %v2012_v26  ;;  %2025 = vlog2.f32 %v1528_v44  ;;  %v1362_v47 = vsel %vm2821_vm6, %v1361_v39, %v1357_v54 }
 0x257   : > { %v2016_v13 = vpop.eup %2015  ;;  %v1410_v11 = vmul.f32 %v2014_v40, %v2810_v38  ;;  %2027 = vlog2.f32 %v1362_v47  ;;  %v1527_v57 = vsub.f32 1.0, %v1362_v47  ;;  %vm1415_vm12 = vweird.f32 %v2014_v40 }
 0x258   : > { %v2018_v12 = vpop.eup %2017  ;;  %v1572_v48 = vmax.f32 %v1547_v32, -100.0  ;;  %v2846_v53 = vmul.f32 %v1508_v29, %v2754_v24  ;;  %v2849_v58 = vadd.f32 1.0, %v2016_v13  ;;  %2029 = vpow2.f32 %v1880_v35  ;;  %vm1416_vm15 = vmor %vm1414_vm9, %vm1415_vm12 }
 0x259   : > { %v2020_v41 = vpop.eup %2019  ;;  %v1411_v52 = vsub.f32 1.0, %v1410_v11  ;;  %2031 = vlog2.f32 %v1527_v57  ;;  %v2859_v63 = vmul.f32 0.6931472, %v2018_v12  ;;  %vm2864_vm14 = vcmp.eq.f32.partialorder %v1433_v7, 8.507059e+37  ;;  %v1465_v7 = vld [vmem:[%s2617_s11 + $0x58] sm:$0xff] }
 0x25a   : > { %v2022_v56 = vpop.eup %2021  ;;  %v2853_v55 = vmul.f32 %v1604_v62, %v1572_v48  ;;  %2033 = vrcp.f32 %v2849_v58  ;;  %v1436_v62 = vor.u32 1.1754944e-38, %v1435_v46  ;;  %v1403_v49 = vand.u32 2147483647, %v2849_v58 }
 0x25b   : > { %v2024_v34 = vpop.eup %2023  ;;  %v1412_v27 = vmul.f32 %v2014_v40, %v1411_v52  ;;  %v1491_v19 = vmul.f32 0.6931472, %v2022_v56  ;;  %v2875_v25 = vmul.f32 0.6931472, %v2020_v41  ;;  %v1405_v59 = vand.u32 2147483648, %v2849_v58 }
 0x25c   : > { %v2026_v8 = vpop.eup %2025  ;;  %v1425_v15 = vmul.f32 %v2024_v34, %v2828_v60  ;;  %vm1430_vm0 = vweird.f32 %v2024_v34  ;;  %v1513_v45 = vmax.f32 %v2859_v63, -100.0  ;;  %v2887_v10 = vmul.f32 %v1509_v4, %v2869_v2 }
 0x25d   : > { %v1413_v5 = vadd.f32 %v2014_v40, %v1412_v27  ;;  %v2028_v39 = vpop.eup %2027  ;;  %v2882_v44 = vmul.f32 0.6931472, %v2026_v8  ;;  %vm1399_vm1 = vweird.f32 %v2849_v58  ;;  %v2897_v35 = vmul.f32 %v1510_v18, %v2872_v33  ;;  %vm1431_vm4 = vmor %vm1429_vm13, %vm1430_vm0 }
 0x25e   : > { %v1426_v51 = vsub.f32 1.0, %v1425_v15  ;;  %v2030_v61 = vpop.eup %2029  ;;  %v1489_v20 = vmul.f32 0.6931472, %v2028_v39  ;;  %v1512_v29 = vmax.f32 %v1491_v19, -100.0  ;;  %vm2903_vm2 = vcmp.eq.f32.partialorder %v1403_v49, 8.507059e+37  ;;  %v1467_v15 = vld [vmem:[%s2617_s11 + $0x68] sm:$0xff] }
 0x25f   : > { %v1417_v0 = vsel %vm1416_vm15, %v2014_v40, %v1413_v5  ;;  %v2032_v26 = vpop.eup %2031  ;;  %v2890_v23 = vadd.f32 1.0, %v2030_v61  ;;  %v1406_v11 = vor.u32 1.1754944e-38, %v1405_v59  ;;  %v1577_v12 = vmax.f32 %v2875_v25, -100.0  ;;  %v1468_v25 = vld [vmem:[%s2617_s11 + $0x70] sm:$0xff] }
 0x260   : > { %v1427_v38 = vmul.f32 %v2024_v34, %v1426_v51  ;;  %v1422_v14 = vsel %vm2855_vm10, %v1421_v1, %v1417_v0  ;;  %v2034_v40 = vpop.eup %2033  ;;  %v1511_v4 = vmax.f32 %v1489_v20, -100.0  ;;  %v1553_v46 = vmul.f32 0.6931472, %v2032_v26 }
 0x261   : > { %2035 = vlog2.f32 %v1422_v14  ;;  %v1531_v32 = vsub.f32 1.0, %v1422_v14  ;;  %v1395_v13 = vmul.f32 %v2034_v40, %v2849_v58  ;;  %v1450_v18 = vand.u32 2147483648, %v2890_v23 }
 0x262   : > { %v1428_v54 = vadd.f32 %v2024_v34, %v1427_v38  ;;  %2037 = vrcp.f32 %v2890_v23  ;;  %v1576_v41 = vmax.f32 %v2882_v44, -100.0  ;;  %v1591_v52 = vmul.f32 %v1511_v4, %v2900_v31 }
 0x263   : > { %2039 = vlog2.f32 %v1531_v32  ;;  %v1396_v48 = vsub.f32 1.0, %v1395_v13  ;;  %vm1400_vm5 = vweird.f32 %v2034_v40  ;;  %v1448_v60 = vand.u32 2147483647, %v2890_v23 }
 0x264   : > { %v1432_v57 = vsel %vm1431_vm4, %v2024_v34, %v1428_v54  ;;  %v1592_v42 = vmul.f32 %v1512_v29, %v1464_v17  ;;  %v1593_v1 = vmul.f32 %v1513_v45, %v1465_v7  ;;  %vm1444_vm6 = vweird.f32 %v2890_v23  ;;  %vm1401_vm3 = vmor %vm1399_vm1, %vm1400_vm5 }
 0x265   : > { %v1437_v56 = vsel %vm2864_vm14, %v1436_v62, %v1432_v57  ;;  %v1397_v63 = vmul.f32 %v2034_v40, %v1396_v48  ;;  %v1451_v34 = vor.u32 1.1754944e-38, %v1450_v18  ;;  %v1575_v5 = vmax.f32 %v1553_v46, -100.0 }
 0x266   : > { %2041 = vlog2.f32 %v1437_v56  ;;  %v1532_v27 = vsub.f32 1.0, %v1437_v56  ;;  %v1605_v49 = vsub.f32 1.0, %v2869_v2  ;;  %v1606_v19 = vsub.f32 1.0, %v2872_v33 }
 0x267   : > { %v2036_v8 = vpop.eup %2035  ;;  %v1398_v62 = vadd.f32 %v2034_v40, %v1397_v63  ;;  %v1607_v51 = vsub.f32 1.0, %v2900_v31  ;;  %vm2930_vm8 = vcmp.eq.f32.partialorder %v1448_v60, 8.507059e+37  ;;  %v1608_v2 = vsub.f32 1.0, %v1464_v17  ;;  %v1466_v60 = vld [vmem:[%s2617_s11 + $0x60] sm:$0xff] }
 0x268   : > { %v2038_v24 = vpop.eup %2037  ;;  %v1497_v39 = vmul.f32 0.6931472, %v2036_v8  ;;  %2043 = vlog2.f32 %v1532_v27  ;;  %v1609_v33 = vsub.f32 1.0, %v1465_v7  ;;  %v1611_v26 = vsub.f32 1.0, %v1467_v15 }
 0x269   : > { %v2040_v59 = vpop.eup %2039  ;;  %v1440_v45 = vmul.f32 %v2038_v24, %v2890_v23  ;;  %vm1445_vm7 = vweird.f32 %v2038_v24  ;;  %v1402_v20 = vsel %vm1401_vm3, %v2034_v40, %v1398_v62  ;;  %v1612_v31 = vsub.f32 1.0, %v1468_v25 }
 0x26a   : > { %v1515_v0 = vmax.f32 %v1497_v39, -100.0  ;;  %v1561_v44 = vmul.f32 0.6931472, %v2040_v59  ;;  %v1407_v14 = vsel %vm2903_vm2, %v1406_v11, %v1402_v20  ;;  %v1621_v58 = vmul.f32 %v1605_v49, %v1573_v9  ;;  %vm1446_vm9 = vmor %vm1444_vm6, %vm1445_vm7  ;;  %v1469_v39 = vld [vmem:[%s2617_s11 + $0x78] sm:$0xff] }
 0x26b   : > { %v1441_v38 = vsub.f32 1.0, %v1440_v45  ;;  %2045 = vlog2.f32 %v1407_v14  ;;  %v1530_v29 = vsub.f32 1.0, %v1407_v14  ;;  %v1622_v40 = vmul.f32 %v1606_v19, %v1574_v21 }
 0x26c   : > { %v2042_v4 = vpop.eup %2041  ;;  %v1579_v32 = vmax.f32 %v1561_v44, -100.0  ;;  %v1595_v54 = vmul.f32 %v1515_v0, %v1467_v15  ;;  %v1623_v18 = vmul.f32 %v1607_v51, %v1575_v5  ;;  %v1624_v47 = vmul.f32 %v1608_v2, %v1576_v41 }
 0x26d   : > { %v1442_v13 = vmul.f32 %v2038_v24, %v1441_v38  ;;  %v1499_v17 = vmul.f32 0.6931472, %v2042_v4  ;;  %2047 = vlog2.f32 %v1530_v29  ;;  %v1625_v11 = vmul.f32 %v1609_v33, %v1577_v12 }
 0x26e   : > { %v2044_v7 = vpop.eup %2043  ;;  %v1627_v46 = vmul.f32 %v1611_v26, %v1579_v32  ;;  %v1635_v57 = vadd.f32 %v2730_v50, %v2722_v43  ;;  %v1636_v3 = vadd.f32 %v2853_v55, %v2846_v53  ;;  %v1637_v21 = vadd.f32 %v1621_v58, %v2887_v10 }
 0x26f   : > { %v1443_v48 = vadd.f32 %v2038_v24, %v1442_v13  ;;  %v1516_v28 = vmax.f32 %v1499_v17, -100.0  ;;  %v1563_v9 = vmul.f32 0.6931472, %v2044_v7  ;;  %v1638_v56 = vadd.f32 %v1622_v40, %v2897_v35 }
 0x270   : > { %v1639_v41 = vadd.f32 %v1623_v18, %v1591_v52  ;;  %v1640_v8 = vadd.f32 %v1624_v47, %v1592_v42  ;;  %v1648_v43 = vsub.f32 0.0, %v2719_v16  ;;  %v1641_v23 = vadd.f32 %v1625_v11, %v1593_v1 }
 0x271   : > { %v1447_v12 = vsel %vm1446_vm9, %v2038_v24, %v1443_v48  ;;  %v1580_v63 = vmax.f32 %v1563_v9, -100.0  ;;  %v1596_v27 = vmul.f32 %v1516_v28, %v1468_v25  ;;  %v2046_v15 = vpop.eup %2045  ;;  %v1643_v5 = vadd.f32 %v1627_v46, %v1595_v54 }
 0x272   : > { %v1452_v50 = vsel %vm2930_vm8, %v1451_v34, %v1447_v12  ;;  %v1495_v49 = vmul.f32 0.6931472, %v2046_v15  ;;  %v1649_v35 = vsub.f32 0.0, %v2759_v6  ;;  %v1610_v52 = vsub.f32 1.0, %v1466_v60 }
 0x273   : > { %2049 = vlog2.f32 %v1452_v50  ;;  %v1533_v53 = vsub.f32 1.0, %v1452_v50  ;;  %v1628_v55 = vmul.f32 %v1612_v31, %v1580_v63  ;;  %v2048_v10 = vpop.eup %2047  ;;  %v1650_v16 = vsub.f32 0.0, %v2749_v30 }
 0x274   : > { %v1514_v19 = vmax.f32 %v1495_v49, -100.0  ;;  %v1559_v24 = vmul.f32 0.6931472, %v2048_v10  ;;  %v1666_v62 = vsel %vm1662_vm11, %v1648_v43, 0.0  ;;  %v1651_v51 = vsub.f32 0.0, %v1635_v57 }
 0x275   : > { %2051 = vlog2.f32 %v1533_v53  ;;  %v1644_v42 = vadd.f32 %v1628_v55, %v1596_v27  ;;  %v1667_v25 = vadd.f32 %v1666_v62, %v2717_v22  ;;  %v1652_v59 = vsub.f32 0.0, %v1636_v3 }
 0x276   : > { %v1578_v34 = vmax.f32 %v1559_v24, -100.0  ;;  %v1594_v1 = vmul.f32 %v1514_v19, %v1466_v60  ;;  %v1668_v45 = vsel %vm1662_vm11, %v1649_v35, 0.0  ;;  %v1670_v20 = vsel %vm1662_vm11, %v1650_v16, 0.0 }
 0x277   : > { %v1669_v2 = vadd.f32 %v1668_v45, %v1667_v25  ;;  %v1613_v44 = vsub.f32 1.0, %v1469_v39  ;;  %v1653_v26 = vsub.f32 0.0, %v1637_v21  ;;  %v1672_v22 = vsel %vm1662_vm11, %v1651_v51, 0.0 }
 0x278   : > { %v1626_v6 = vmul.f32 %v1610_v52, %v1578_v34  ;;  %v1674_v58 = vsel %vm1662_vm11, %v1652_v59, 0.0  ;;  %v1654_v54 = vsub.f32 0.0, %v1638_v56  ;;  %v1655_v13 = vsub.f32 0.0, %v1639_v41 }
 0x279   : > { %v2050_v61 = vpop.eup %2049  ;;  %v1671_v38 = vadd.f32 %v1670_v20, %v1669_v2  ;;  %v1676_v18 = vsel %vm1662_vm11, %v1653_v26, 0.0  ;;  %v1656_v11 = vsub.f32 0.0, %v1640_v8  ;;  %v1657_v9 = vsub.f32 0.0, %v1641_v23 }
 0x27a   : > { %v1501_v33 = vmul.f32 0.6931472, %v2050_v61  ;;  %v1642_v30 = vadd.f32 %v1626_v6, %v1594_v1  ;;  %v1678_v46 = vsel %vm1662_vm11, %v1654_v54, 0.0  ;;  %v1680_v48 = vsel %vm1662_vm11, %v1655_v13, 0.0 }
 0x27b   : > { %v2052_v0 = vpop.eup %2051  ;;  %v1673_v4 = vadd.f32 %v1672_v22, %v1671_v38  ;;  %v1682_v21 = vsel %vm1662_vm11, %v1656_v11, 0.0  ;;  %v1659_v56 = vsub.f32 0.0, %v1643_v5  ;;  %v1684_v41 = vsel %vm1662_vm11, %v1657_v9, 0.0 }
 0x27c   : > { %v1517_v14 = vmax.f32 %v1501_v33, -100.0  ;;  %v1565_v31 = vmul.f32 0.6931472, %v2052_v0  ;;  %v1658_v57 = vsub.f32 0.0, %v1642_v30  ;;  %v1660_v27 = vsub.f32 0.0, %v1644_v42 }
 0x27d   : > { %v1675_v17 = vadd.f32 %v1674_v58, %v1673_v4  ;;  %v1688_v43 = vsel %vm1662_vm11, %v1659_v56, 0.0  ;;  %v1704_v16 = vshrl.u32 %v613_v36, 7  ;;  %vm1706_vm12 = vcmp.eq.s32.totalorder %v2241_v37, 0 }
 0x27e   : > { %v1581_v29 = vmax.f32 %v1565_v31, -100.0  ;;  %v1597_v32 = vmul.f32 %v1517_v14, %v1469_v39  ;;  %v1686_v60 = vsel %vm1662_vm11, %v1658_v57, 0.0  ;;  %v1690_v23 = vsel %vm1662_vm11, %v1660_v27, 0.0 }
 0x27f   : > { %v1677_v7 = vadd.f32 %v1676_v18, %v1675_v17  ;;  %vm1705_vm10 = vcmp.eq.s32.totalorder %v1704_v16, 0 }
 0x280   : > { %v1629_v40 = vmul.f32 %v1613_v44, %v1581_v29 }
 0x281   : > { %v1679_v28 = vadd.f32 %v1678_v46, %v1677_v7 }
 0x282   : > { %v1645_v47 = vadd.f32 %v1629_v40, %v1597_v32 }
 0x283   : > { %v1681_v3 = vadd.f32 %v1680_v48, %v1679_v28 }
 0x284   : > { %v1661_v15 = vsub.f32 0.0, %v1645_v47 }
 0x285   : > { %v1683_v12 = vadd.f32 %v1682_v21, %v1681_v3 }
 0x286   : > { %v1692_v49 = vsel %vm1662_vm11, %v1661_v15, 0.0  ;;  %vm1707_vm11 = vmand %vm1705_vm10, %vm1706_vm12 }
 0x287   : > { %v1685_v63 = vadd.f32 %v1684_v41, %v1683_v12 }
 0x289   : > { %v1687_v8 = vadd.f32 %v1686_v60, %v1685_v63 }
 0x28b   : > { %v1689_v50 = vadd.f32 %v1688_v43, %v1687_v8 }
 0x28d   : > { %v1691_v53 = vadd.f32 %v1690_v23, %v1689_v50 }
 0x28f   : > { %v1693_v55 = vadd.f32 %v1692_v49, %v1691_v53 }
 0x291   : > { %1694 = vadd.xlane.f32.xlu2 %v1693_v55 }
 0x304   : > { %v1695_v5 = vpop.xlane.xlu2 %1694 }
 0x305   : > { %v1696_v10 = vrot.slane %v1695_v5, 4 }
 0x307   : > { %v1697_v35 = vadd.f32 %v1696_v10, %v1695_v5 }
 0x309   : > { %v1698_v52 = vrot.slane %v1697_v35, 2 }
 0x30b   : > { %v1699_v19 = vadd.f32 %v1698_v52, %v1697_v35 }
 0x30d   : > { %v1700_v24 = vrot.slane %v1699_v19, 1 }
 0x30f   : > { %v1701_v42 = vadd.f32 %v1700_v24, %v1699_v19 }
 0x311   : > { %1889 = vpush %v1701_v42 }
 0x342   : > { %s1890_s16 = spop %1889 }
 0x343   : > { %v1708_v62 = vstv %s1890_s16 }
 0x344   : > { %v1709_v34 = vsel %vm1707_vm11, %v1708_v62, 0.0 }
 0x345   : > { %1710 = vst [vmem:[%s351_s15] sm:$0xff] %v1709_v34 }
 0x346 PF: > { %s20_s29 = sadd.s32 1, %s2059_s29  }
 0x347   : > { %p17_p5 = scmp.ge.s32.totalorder %s20_s29, 4  }
 0x349   :  { %19 = sbr.rel (!%p17_p5) target bundleno = 3 (0x3), region = 88 }

</bundles_post_ra>
